<compile_context>
chip_gen: v6e
topology: v6e:2x2x1
jax: 0.10.0
libtpu: 0.0.40
codegen_flags: <defaults>
</compile_context>

<pallas_src>
import numpy as np
import jax
import jax.numpy as jnp
from jax.experimental import pallas as pl
from jax.experimental.pallas import tpu as pltpu


# ----------------------------------------------------------------------------------------------
# Trace-time (numpy) interpolation-matrix construction.
# ----------------------------------------------------------------------------------------------
def _round_up(v: int, m: int) -> int:
    return ((v + m - 1) // m) * m


def _interp_matrix_np(l_in: int, l_out: int) -> np.ndarray:
    """Bilinear interpolation matrix (align_corners=True), shape (l_out, l_in), float32."""
    a = np.zeros((l_out, l_in), np.float32)
    if l_out == 1:
        src = np.zeros((1,), np.float64)
    else:
        src = np.arange(l_out, dtype=np.float64) * (l_in - 1) / (l_out - 1)
    i0 = np.clip(np.floor(src).astype(np.int64), 0, l_in - 1)
    i1 = np.clip(i0 + 1, 0, l_in - 1)
    frac = (src - i0).astype(np.float32)
    rows = np.arange(l_out)
    np.add.at(a, (rows, i0), 1.0 - frac)
    np.add.at(a, (rows, i1), frac)
    return a


def _padded_interp_matrix_np(l_in: int, l_out: int, l_target: int, pad_lo: int) -> np.ndarray:
    """(l_target, l_in): row t is the interp row for upsampled position (t - pad_lo), or all-zero
    if that position falls outside [0, l_out).  Handles negative pad (crop)."""
    a = _interp_matrix_np(l_in, l_out)
    out = np.zeros((l_target, l_in), np.float32)
    for t in range(l_target):
        s = t - pad_lo
        if 0 <= s < l_out:
            out[t] = a[s]
    return out


# ----------------------------------------------------------------------------------------------
# Generation-aware hardware parameters (perf heuristics only; safe fallbacks).
# ----------------------------------------------------------------------------------------------
def _tpu_hw(compute_itemsize: int):
    """Returns (mxu_flops, hbm_bytes_per_s, vmem_limit_bytes, vmem_block_budget_bytes)."""
    kind = ""
    try:
        kind = jax.devices()[0].device_kind.lower()
    except Exception:
        pass
    vmem_cap = None
    try:
        vmem_cap = int(pltpu.get_tpu_info().vmem_capacity_bytes)
    except Exception:
        pass
    if "v5" in kind:
        peak, bw = 197e12, 0.8e12
        vmem_cap = vmem_cap or (128 << 20)
    elif "v7" in kind:
        peak, bw = 996e12, 3.2e12
        vmem_cap = vmem_cap or (64 << 20)
    elif "v6" in kind:
        peak, bw = 918e12, 1.35e12
        vmem_cap = vmem_cap or (128 << 20)
    else:
        peak, bw = 918e12, 1.35e12
        vmem_cap = vmem_cap or (64 << 20)          # unknown chip: assume the smaller VMEM
    if vmem_cap >= (96 << 20):                     # v5e / v6e: 128 MiB physical per core
        vmem_limit, budget = 64 << 20, 40 << 20
    else:                                          # v7x: 64 MiB per TensorCore
        vmem_limit, budget = 48 << 20, 24 << 20
    if compute_itemsize >= 4:
        peak = peak / 3.0                          # f32 matmul ~ 3 MXU passes
    return peak, bw, vmem_limit, budget


# ----------------------------------------------------------------------------------------------
# Kernels.
# ----------------------------------------------------------------------------------------------
def _kron_kernel(x_ref, kt_ref, o_ref):
    # x_ref:  (b, hi*wi)      compute dtype
    # kt_ref: (hi*wi, hw_pad) compute dtype, resident (padding baked in as zero rows/cols of K)
    # o_ref:  (b, hw_pad)     output dtype
    o_ref[...] = jnp.dot(x_ref[...], kt_ref[...],
                         preferred_element_type=jnp.float32).astype(o_ref.dtype)


def _separable_kernel(x_ref, ah_ref, awt_ref, o_ref, tmp_ref):
    # x_ref:   (b, hi, wi); ah_ref: (th, hi); awt_ref: (wi, w_pad) resident
    # o_ref:   (b, th, w_pad); tmp_ref: (b, hi, w_pad) f32 scratch (W-pass cache per ch-batch)
    b, hi, wi = x_ref.shape

    @pl.when(pl.program_id(1) == 0)
    def _():
        xf = x_ref[...].reshape(b * hi, wi)                  # last dim unchanged -> no relayout
        tmp = jnp.dot(xf, awt_ref[...], preferred_element_type=jnp.float32)
        tmp_ref[...] = tmp.reshape(b, hi, tmp.shape[-1])     # keep f32 (no extra rounding)

    ah = ah_ref[...].astype(jnp.float32)                     # hoisted out of the channel loop
    for ci in range(b):                                      # b is small & static
        o_ref[ci, :, :] = jnp.dot(ah, tmp_ref[ci],
                                  preferred_element_type=jnp.float32).astype(o_ref.dtype)


# ----------------------------------------------------------------------------------------------
# Wrappers.
# ----------------------------------------------------------------------------------------------
def _simple_up_kron(x, w, h, h_up, w_up, pad_t, pad_l, compute_dtype,
                    hw_pad, vmem_limit, budget):
    n, c, hi, wi = x.shape
    nc = n * c
    cd_isz = jnp.dtype(compute_dtype).itemsize
    out_isz = jnp.dtype(x.dtype).itemsize

    # K = kron(A_h_pad, A_w_pad): F.pad / crop baked in as zero rows; built with numpy at trace
    # time so no scatter/kron/transpose ops remain in the per-call graph.
    a_h_pad = _padded_interp_matrix_np(hi, h_up, h, pad_t)          # (h, hi)
    a_w_pad = _padded_interp_matrix_np(wi, w_up, w, pad_l)          # (w, wi)
    kt_np = np.zeros((hi * wi, hw_pad), np.float32)
    kt_np[:, : h * w] = np.kron(a_h_pad, a_w_pad).T                 # (hi*wi, h*w) -> lane-padded
    kt = jnp.asarray(kt_np, dtype=compute_dtype)

    x_flat = x.reshape(nc, hi * wi).astype(compute_dtype)

    # Channel-batch sizing: cdiv grid (partial last block handled by Pallas), sublane-pack
    # multiple, VMEM budget with single-buffered resident K, >= 2 steps when nc allows (v7x).
    sub = 16 if cd_isz <= 2 else 8
    if nc <= sub:
        b = nc
    else:
        k_buf = (hi * wi) * hw_pad * cd_isz
        per_row = 2 * (hi * wi) * cd_isz + 2 * hw_pad * out_isz
        cap = max(sub, int((budget - k_buf) // max(per_row, 1)))
        b = max(sub, (min(256, cap, nc) // sub) * sub)
        if b >= nc and nc >= 2 * sub:
            b = _round_up(pl.cdiv(nc, 2), sub)
    grid = (pl.cdiv(nc, b),)

    flops = 2 * nc * (hi * wi) * (h * w)
    bytes_accessed = nc * (hi * wi) * cd_isz + kt.size * cd_isz + nc * hw_pad * out_isz

    def run(single_buffer_k):
        if single_buffer_k:
            kt_spec = pl.BlockSpec((hi * wi, hw_pad), lambda i: (0, 0),
                                   pipeline_mode=pl.Buffered(1))
        else:
            kt_spec = pl.BlockSpec((hi * wi, hw_pad), lambda i: (0, 0))
        return pl.pallas_call(
            _kron_kernel,
            out_shape=jax.ShapeDtypeStruct((nc, hw_pad), x.dtype),
            grid_spec=pltpu.PrefetchScalarGridSpec(
                num_scalar_prefetch=0,
                grid=grid,
                in_specs=[pl.BlockSpec((b, hi * wi), lambda i: (i, 0)), kt_spec],
                out_specs=pl.BlockSpec((b, hw_pad), lambda i: (i, 0)),
            ),
            compiler_params=pltpu.CompilerParams(
                dimension_semantics=("parallel",),
                vmem_limit_bytes=vmem_limit),
            cost_estimate=pl.CostEstimate(flops=int(flops), transcendentals=0,
                                          bytes_accessed=int(bytes_accessed)),
        )(x_flat, kt)

    try:
        out_flat = run(True)        # resident K single-buffered (frees VMEM for a bigger batch)
    except Exception:
        out_flat = run(False)       # fallback if pipeline_mode=pl.Buffered(1) is unsupported

    if hw_pad != h * w:
        out_flat = out_flat[:, : h * w]
    return out_flat.reshape(n, c, h, w)


def _simple_up_separable(x, w, h, h_up, w_up, pad_t, pad_l, compute_dtype,
                         vmem_limit, budget):
    n, c, hi, wi = x.shape
    nc = n * c
    cd_isz = jnp.dtype(compute_dtype).itemsize
    out_isz = jnp.dtype(x.dtype).itemsize
    w_pad = _round_up(w_up, 128)             # lane-dense stores / full MXU N tiles

    a_h = jnp.asarray(_interp_matrix_np(hi, h_up), dtype=compute_dtype)      # (h_up, hi)
    awt_np = np.zeros((wi, w_pad), np.float32)
    awt_np[:, :w_up] = _interp_matrix_np(wi, w_up).T                         # (wi, w_up)
    a_w_t = jnp.asarray(awt_np, dtype=compute_dtype)

    x3 = x.reshape(nc, hi, wi).astype(compute_dtype)

    # Block sizing: batch channels per step and tile h_up; shrink until double-buffered blocks
    # plus the per-channel-batch f32 W-pass scratch fit the per-generation VMEM budget.
    b = min(nc, 16 if cd_isz <= 2 else 8)
    th = h_up if h_up <= 512 else 512

    def usage(b_, th_):
        return (2 * b_ * hi * wi * cd_isz + 2 * th_ * hi * cd_isz
                + wi * w_pad * cd_isz + 2 * b_ * th_ * w_pad * out_isz
                + b_ * hi * w_pad * 4)

    while b > 1 and usage(b, th) > budget:
        b = max(1, b // 2)
    while th > 8 and usage(b, th) > budget:
        th = max(8, ((th // 2) // 8) * 8)
    # TODO(synk): for extreme hi*wi where even (b=1, th=8) overflows the budget, additionally
    # tile the W axis of the W-pass scratch.

    grid = (pl.cdiv(nc, b), pl.cdiv(h_up, th))

    flops = 2 * nc * hi * w_pad * (wi + h_up)
    bytes_accessed = (x3.size * cd_isz + a_h.size * cd_isz + a_w_t.size * cd_isz
                      + nc * h_up * w_pad * out_isz)

    def run(single_buffer_awt):
        if single_buffer_awt:
            awt_spec = pl.BlockSpec((wi, w_pad), lambda i, j: (0, 0),
                                    pipeline_mode=pl.Buffered(1))
        else:
            awt_spec = pl.BlockSpec((wi, w_pad), lambda i, j: (0, 0))
        return pl.pallas_call(
            _separable_kernel,
            out_shape=jax.ShapeDtypeStruct((nc, h_up, w_pad), x.dtype),
            grid_spec=pltpu.PrefetchScalarGridSpec(
                num_scalar_prefetch=0,
                grid=grid,
                in_specs=[
                    pl.BlockSpec((b, hi, wi), lambda i, j: (i, 0, 0)),
                    pl.BlockSpec((th, hi), lambda i, j: (j, 0)),
                    awt_spec,
                ],
                out_specs=pl.BlockSpec((b, th, w_pad), lambda i, j: (i, j, 0)),
                scratch_shapes=[pltpu.VMEM((b, hi, w_pad), jnp.float32)],
            ),
            compiler_params=pltpu.CompilerParams(
                dimension_semantics=("parallel", "arbitrary"),
                vmem_limit_bytes=vmem_limit),
            cost_estimate=pl.CostEstimate(flops=int(flops), transcendentals=0,
                                          bytes_accessed=int(bytes_accessed)),
        )(x3, a_h, a_w_t)

    try:
        up = run(True)
    except Exception:
        up = run(False)

    up = up.reshape(n, c, h_up, w_pad)
    # lax.pad supports negative edge padding: the negative high pad on the last axis crops the
    # lane padding (and handles the crop case when the target is smaller than the upsample).
    pad_cfg = [(0, 0, 0), (0, 0, 0),
               (pad_t, (h - h_up) - pad_t, 0),
               (pad_l, (w - w_pad) - pad_l, 0)]
    return jax.lax.pad(up, jnp.array(0, up.dtype), pad_cfg)


def simple_up(x, w, h, scale_factor=2, *, compute_dtype=jnp.float32, force_path=None):
    """Matches SimpleUp.forward(x1, w, h): bilinear x`scale_factor` upsample (align_corners=True)
    followed by F.pad to spatial size (h, w).  x: (N, C, H, W)."""
    n, c, hi, wi = x.shape
    h, w = int(h), int(w)
    h_up, w_up = hi * scale_factor, wi * scale_factor
    pad_t = (h - h_up) // 2          # Python floor-div matches F.pad's diff // 2 (crop = negative)
    pad_l = (w - w_up) // 2
    nc = n * c

    cd_isz = jnp.dtype(compute_dtype).itemsize
    out_isz = jnp.dtype(x.dtype).itemsize
    peak, hbm_bw, vmem_limit, budget = _tpu_hw(cd_isz)

    hw_pad = _round_up(h * w, 128)
    k_bytes = (hi * wi) * hw_pad * cd_isz
    # Roofline crossover: the fused kron matmul does ~(h*w)/(w_up+h_up)x more FLOPs than the
    # separable path; take it only while it stays (near) memory-/overhead-bound on this chip
    # and K comfortably fits the VMEM block budget.
    kron_bytes = nc * (hi * wi) * cd_isz + nc * hw_pad * out_isz + k_bytes
    mxu_time = 2.0 * nc * (hi * wi) * (h * w) / peak
    mem_time = kron_bytes / hbm_bw
    use_kron = (k_bytes * 3 <= budget) and (mxu_time <= 1.5 * max(mem_time, 2e-6))

    if force_path == "kron":
        use_kron = True
    elif force_path == "separable":
        use_kron = False

    if use_kron:
        return _simple_up_kron(x, w, h, h_up, w_up, pad_t, pad_l, compute_dtype,
                               hw_pad, vmem_limit, budget)
    return _simple_up_separable(x, w, h, h_up, w_up, pad_t, pad_l, compute_dtype,
                                vmem_limit, budget)


# ----------------------------------------------------------------------------------------------
# Pure-JAX reference (gather + lerp in f32; no matmul, so no MXU precision ambiguity).
# ----------------------------------------------------------------------------------------------
def _reference(x, w, h, scale_factor=2):
    n, c, hi, wi = x.shape
    h_up, w_up = hi * scale_factor, wi * scale_factor

    def coords(l_in, l_out):
        if l_out == 1:
            src = jnp.zeros((1,), jnp.float32)
        else:
            src = jnp.arange(l_out, dtype=jnp.float32) * (l_in - 1) / (l_out - 1)
        i0 = jnp.clip(jnp.floor(src).astype(jnp.int32), 0, l_in - 1)
        i1 = jnp.clip(i0 + 1, 0, l_in - 1)
        return i0, i1, src - i0.astype(jnp.float32)

    y0, y1, fy = coords(hi, h_up)
    x0, x1, fx = coords(wi, w_up)
    xf = x.astype(jnp.float32)
    top = (xf[:, :, y0, :] * (1.0 - fy)[None, None, :, None]
           + xf[:, :, y1, :] * fy[None, None, :, None])
    up = top[:, :, :, x0] * (1.0 - fx) + top[:, :, :, x1] * fx
    dy, dx = h - h_up, w - w_up
    up = jax.lax.pad(up, jnp.array(0, up.dtype),
                     [(0, 0, 0), (0, 0, 0),
                      (dy // 2, dy - dy // 2, 0),
                      (dx // 2, dx - dx // 2, 0)])
    return up.astype(x.dtype)


if __name__ == "__main__":
    key = jax.random.PRNGKey(0)
    x = jax.random.normal(key, (2, 4, 16, 16), dtype=jnp.float32)
    target_h, target_w = 36, 36      # upsampled to 32x32, then zero-padded by 2 on each side

    ref = _reference(x, target_w, target_h)

    # Main path: single fused lane-dense kron matmul (f32 compute by default).
    out = jax.block_until_ready(simple_up(x, target_w, target_h))
    assert out.shape == (2, 4, 36, 36)
    assert jnp.allclose(out, ref, atol=5e-2, rtol=2e-2)

    # Same path with bf16 compute (precision/perf knob).
    out_bf = jax.block_until_ready(
        simple_up(x, target_w, target_h, compute_dtype=jnp.bfloat16))
    assert jnp.allclose(out_bf, ref, atol=5e-2, rtol=2e-2)

    # Separable fallback path (auto-selected for large spatial sizes / weak-MXU chips).
    out_sep = jax.block_until_ready(
        simple_up(x, target_w, target_h, force_path="separable"))
    assert jnp.allclose(out_sep, ref, atol=5e-2, rtol=2e-2)

    print("KERNEL_OK")
</pallas_src>

<mosaic_0001>
module attributes {stable_mosaic.version = 11 : i64} {
  func.func @_kron_kernel(%arg0: i32, %arg1: memref<8x256xf32, #tpu.memory_space<vmem>>, %arg2: memref<256x1408xf32, #tpu.memory_space<vmem>>, %arg3: memref<8x1408xf32, #tpu.memory_space<vmem>>) attributes {dimension_semantics = [#tpu.dimension_semantics<parallel>], iteration_bounds = array<i64: 1>, scalar_prefetch = 0 : i64, scratch_operands = 0 : i64, tpu.core_type = #tpu.core_type<tc>, window_params = [{transform_indices = @transform_0, window_bounds = array<i64: 8, 256>}, {pipeline_mode = #tpu.pipeline_mode<synchronous>, transform_indices = @transform_1, window_bounds = array<i64: 256, 1408>}, {transform_indices = @transform_2, window_bounds = array<i64: 8, 1408>}]} {
    %c0 = arith.constant 0 : index
    %c0_0 = arith.constant 0 : index
    %0 = vector.load %arg1[%c0, %c0_0] : memref<8x256xf32, #tpu.memory_space<vmem>>, vector<8x256xf32>
    %c0_1 = arith.constant 0 : index
    %c0_2 = arith.constant 0 : index
    %1 = vector.load %arg2[%c0_1, %c0_2] : memref<256x1408xf32, #tpu.memory_space<vmem>>, vector<256x1408xf32>
    %cst = arith.constant dense<0.000000e+00> : vector<8x1408xf32>
    %2 = tpu.matmul %0, %1, %cst {dimension_numbers = #tpu.dot_dimension_numbers<[1], [0], [0], [1], [0, 0, 1, 1], [], []>} : vector<8x256xf32>, vector<256x1408xf32>, vector<8x1408xf32> -> vector<8x1408xf32>
    %c0_3 = arith.constant 0 : index
    %c0_4 = arith.constant 0 : index
    %3 = vector.load %arg3[%c0_3, %c0_4] : memref<8x1408xf32, #tpu.memory_space<vmem>>, vector<8x1408xf32>
    tpu.vector_store %arg3[%c0_3, %c0_4], %2 {strides = array<i32>} : memref<8x1408xf32, #tpu.memory_space<vmem>>, vector<8x1408xf32>,
    return
  }
  func.func @transform_0(%arg0: i32) -> (i32, i32) {
    %c0_i32 = arith.constant 0 : i32
    %c0_i32_0 = arith.constant 0 : i32
    return %arg0, %c0_i32 : i32, i32
  }
  func.func @transform_1(%arg0: i32) -> (i32, i32) {
    %c0_i32 = arith.constant 0 : i32
    %c0_i32_0 = arith.constant 0 : i32
    %c0_i32_1 = arith.constant 0 : i32
    return %c0_i32, %c0_i32_0 : i32, i32
  }
  func.func @transform_2(%arg0: i32) -> (i32, i32) {
    %c0_i32 = arith.constant 0 : i32
    %c0_i32_0 = arith.constant 0 : i32
    return %arg0, %c0_i32 : i32, i32
  }
}

module attributes {stable_mosaic.version = 11 : i64} {
  func.func @_kron_kernel(%arg0: i32, %arg1: memref<8x256xf32, #tpu.memory_space<vmem>>, %arg2: memref<256x1408xf32, #tpu.memory_space<vmem>>, %arg3: memref<8x1408xf32, #tpu.memory_space<vmem>>) attributes {dimension_semantics = [#tpu.dimension_semantics<parallel>], iteration_bounds = array<i64: 1>, scalar_prefetch = 0 : i64, scratch_operands = 0 : i64, tpu.core_type = #tpu.core_type<tc>, window_params = [{transform_indices = @transform_0, window_bounds = array<i64: 8, 256>}, {pipeline_mode = #tpu.pipeline_mode<synchronous>, transform_indices = @transform_1, window_bounds = array<i64: 256, 1408>}, {transform_indices = @transform_2, window_bounds = array<i64: 8, 1408>}]} {
    %c0 = arith.constant 0 : index
    %c0_0 = arith.constant 0 : index
    %0 = vector.load %arg1[%c0, %c0_0] : memref<8x256xf32, #tpu.memory_space<vmem>>, vector<8x256xf32>
    %c0_1 = arith.constant 0 : index
    %c0_2 = arith.constant 0 : index
    %1 = vector.load %arg2[%c0_1, %c0_2] : memref<256x1408xf32, #tpu.memory_space<vmem>>, vector<256x1408xf32>
    %cst = arith.constant dense<0.000000e+00> : vector<8x1408xf32>
    %2 = tpu.matmul %0, %1, %cst {dimension_numbers = #tpu.dot_dimension_numbers<[1], [0], [0], [1], [0, 0, 1, 1], [], []>} : vector<8x256xf32>, vector<256x1408xf32>, vector<8x1408xf32> -> vector<8x1408xf32>
    %c0_3 = arith.constant 0 : index
    %c0_4 = arith.constant 0 : index
    %3 = vector.load %arg3[%c0_3, %c0_4] : memref<8x1408xf32, #tpu.memory_space<vmem>>, vector<8x1408xf32>
    tpu.vector_store %arg3[%c0_3, %c0_4], %2 {strides = array<i32>} : memref<8x1408xf32, #tpu.memory_space<vmem>>, vector<8x1408xf32>,
    return
  }
  func.func @transform_0(%arg0: i32) -> (i32, i32) {
    %c0_i32 = arith.constant 0 : i32
    %c0_i32_0 = arith.constant 0 : i32
    return %arg0, %c0_i32 : i32, i32
  }
  func.func @transform_1(%arg0: i32) -> (i32, i32) {
    %c0_i32 = arith.constant 0 : i32
    %c0_i32_0 = arith.constant 0 : i32
    %c0_i32_1 = arith.constant 0 : i32
    return %c0_i32, %c0_i32_0 : i32, i32
  }
  func.func @transform_2(%arg0: i32) -> (i32, i32) {
    %c0_i32 = arith.constant 0 : i32
    %c0_i32_0 = arith.constant 0 : i32
    return %arg0, %c0_i32 : i32, i32
  }
}

</mosaic_0001>

<bundles_post_ra>
// kernel: tpu_custom_call.1
= control target key start
LH: loop header
LB: loop body
LE: loop exit
PB: predicated region body
PF: predicated region fallthrough
CT: control target
= control target key end

     0   :  { %7 = vsyncpa [#allocation3], 0  ;;  %s994_s0 = inlined_call_operand.hbm [shape: f32[8,256], index: 0, kind: input, shape index: {}]   ;;  %s995_s1 = inlined_call_operand.hbm [shape: f32[256,1408], index: 1, kind: input, shape index: {}]   ;;  %s996_s2 = inlined_call_operand.hbm [shape: f32[8,1408], index: 2, kind: output, shape index: {}]  }
   0x1   :  { %8 = vsyncpa [#allocation6], 0 }
   0x2   :  { %9 = vsyncpa [#allocation4], 0  ;;  %s951_s9 = smov [#allocation2]   ;;  %s952_s11 = smov [#allocation5]  }
   0x3   :  { %s16_s10 = sshll.u32 %s951_s9, 4  ;;  %s25_s12 = sshll.u32 %s952_s11, 4  ;;  %s17_s10 = int_to_ptr.vmem [resolvable:$true] %s16_s10  ;;  %s26_s12 = int_to_ptr.vmem [resolvable:$true] %s25_s12 }
   0x4   :  { %s893_s13 = scalar_lea.vmem %s17_s10, 256  ;;  %p898_p1 = scmp.lt.s32.totalorder %s17_s10, %s17_s10 }
   0x5   :  { %p894_p0 = scmp.ne.s32.totalorder %s17_s10, %s893_s13  ;;  %p899_p2 = scmp.lt.s32.totalorder %s893_s13, %s893_s13 }
   0x7   :  { %p900_p3 = por %p899_p2, %p898_p1 }
   0x9   :  { %p901_p4 = pnand %p900_p3, %p894_p0 }
   0xb   :  { %904 = shalt.err (!%p901_p4)
}
   0xc   :  { %19 = dma.hbm_to_vmem [thread:$0]  %s994_s0, 256, %s17_s10, [#allocation3]  }
   0xd   :  { %s913_s16 = scalar_lea.vmem %s26_s12, 45056  ;;  %p918_p6 = scmp.lt.s32.totalorder %s26_s12, %s26_s12 }
   0xe   :  { %p914_p5 = scmp.ne.s32.totalorder %s26_s12, %s913_s16  ;;  %p919_p7 = scmp.lt.s32.totalorder %s913_s16, %s913_s16 }
  0x10   :  { %p920_p8 = por %p919_p7, %p918_p6 }
  0x12   :  { %p921_p9 = pnand %p920_p8, %p914_p5 }
  0x14   :  { %924 = shalt.err (!%p921_p9)
}
  0x15   :  { %s953_s17 = smov 1408   ;;  %s954_s18 = smov 88  }
  0x16   :  { %31 = dma.hbm_to_vmem [thread:$0]  %s995_s1, 45056, %s26_s12, [#allocation6], %s953_s17, %s953_s17, %s954_s18  }
  0x17   :  { %945 = dma.done.wait [#allocation3], 256  }
  0x18   :  { %946 = vsyncadd [#allocation3], 4294967040 }
  0x19   :  { %947 = dma.done.wait [#allocation6], 45056  }
  0x1a   :  { %948 = vsyncadd [#allocation6], 4294922240  ;;  %v206_v0 = vld [vmem:[#allocation5 + $0x530] sm:$0xff]  ;;  %v205_v1 = vld [vmem:[#allocation5 + $0x528] sm:$0xff]  ;;  %s955_s0 = smov [#allocation7]  }
  0x1b   :  { %v195_v2 = vld [vmem:[#allocation5 + $0x4d8] sm:$0xff]  ;;  %392 = vmatprep.subr.mxu0 %v206_v0  ;;  %v194_v3 = vld [vmem:[#allocation5 + $0x4d0] sm:$0xff]  ;;  %v184_v4 = vld [vmem:[#allocation5 + $0x480] sm:$0xff]  ;;  %s834_s1 = sshll.u32 %s955_s0, 4  ;;  %s835_s1 = int_to_ptr.vmem [resolvable:$true] %s834_s1 }
  0x1c   :  { %393 = vmatpush1.msra.mxu0 %v205_v1  ;;  %v183_v5 = vld [vmem:[#allocation5 + $0x478] sm:$0xff]  ;;  %v173_v6 = vld [vmem:[#allocation5 + $0x428] sm:$0xff]  ;;  %v172_v7 = vld [vmem:[#allocation5 + $0x420] sm:$0xff]  ;;  %s925_s21 = scalar_lea.vmem %s835_s1, 1408  ;;  %p930_p11 = scmp.lt.s32.totalorder %s835_s1, %s835_s1 }
  0x1d   :  { %394 = vmatprep.subr.mxu0 %v195_v2  ;;  %v162_v8 = vld [vmem:[#allocation5 + $0x3d0] sm:$0xff]  ;;  %v161_v9 = vld [vmem:[#allocation5 + $0x3c8] sm:$0xff]  ;;  %v151_v10 = vld [vmem:[#allocation5 + $0x378] sm:$0xff]  ;;  %p926_p10 = scmp.ne.s32.totalorder %s835_s1, %s925_s21  ;;  %p931_p12 = scmp.lt.s32.totalorder %s925_s21, %s925_s21 }
  0x1e   :  { %395 = vmatpush1.msra.mxu0 %v194_v3  ;;  %v150_v11 = vld [vmem:[#allocation5 + $0x370] sm:$0xff]  ;;  %v208_v12 = vld [vmem:[#allocation5 + $0x540] sm:$0xff]  ;;  %v207_v14 = vld [vmem:[#allocation5 + $0x538] sm:$0xff] }
  0x1f   :  { %396 = vmatprep.subr.mxu0 %v184_v4  ;;  %v140_v13 = vld [vmem:[#allocation5 + $0x320] sm:$0xff]  ;;  %463 = vmatprep.subr.mxu1 %v208_v12  ;;  %v139_v15 = vld [vmem:[#allocation5 + $0x318] sm:$0xff]  ;;  %v197_v16 = vld [vmem:[#allocation5 + $0x4e8] sm:$0xff]  ;;  %p932_p13 = por %p931_p12, %p930_p11 }
  0x20   :  { %397 = vmatpush1.msra.mxu0 %v183_v5  ;;  %464 = vmatpush1.msra.mxu1 %v207_v14  ;;  %v196_v17 = vld [vmem:[#allocation5 + $0x4e0] sm:$0xff]  ;;  %v129_v18 = vld [vmem:[#allocation5 + $0x2c8] sm:$0xff]  ;;  %v186_v19 = vld [vmem:[#allocation5 + $0x490] sm:$0xff] }
  0x21   :  { %398 = vmatprep.subr.mxu0 %v173_v6  ;;  %465 = vmatprep.subr.mxu1 %v197_v16  ;;  %v128_v20 = vld [vmem:[#allocation5 + $0x2c0] sm:$0xff]  ;;  %v185_v21 = vld [vmem:[#allocation5 + $0x488] sm:$0xff]  ;;  %v175_v22 = vld [vmem:[#allocation5 + $0x438] sm:$0xff]  ;;  %p933_p0 = pnand %p932_p13, %p926_p10 }
  0x22   :  { %399 = vmatpush1.msra.mxu0 %v172_v7  ;;  %466 = vmatpush1.msra.mxu1 %v196_v17  ;;  %v118_v23 = vld [vmem:[#allocation5 + $0x270] sm:$0xff]  ;;  %v117_v25 = vld [vmem:[#allocation5 + $0x268] sm:$0xff]  ;;  %v164_v26 = vld [vmem:[#allocation5 + $0x3e0] sm:$0xff] }
  0x23   :  { %400 = vmatprep.subr.mxu0 %v162_v8  ;;  %467 = vmatprep.subr.mxu1 %v186_v19  ;;  %v174_v24 = vld [vmem:[#allocation5 + $0x430] sm:$0xff]  ;;  %v107_v27 = vld [vmem:[#allocation5 + $0x218] sm:$0xff]  ;;  %v153_v30 = vld [vmem:[#allocation5 + $0x388] sm:$0xff] }
  0x24   :  { %401 = vmatpush1.msra.mxu0 %v161_v9  ;;  %468 = vmatpush1.msra.mxu1 %v185_v21  ;;  %v163_v28 = vld [vmem:[#allocation5 + $0x3d8] sm:$0xff]  ;;  %v106_v29 = vld [vmem:[#allocation5 + $0x210] sm:$0xff]  ;;  %v96_v31 = vld [vmem:[#allocation5 + $0x1c0] sm:$0xff] }
  0x25   :  { %402 = vmatprep.subr.mxu0 %v151_v10  ;;  %469 = vmatprep.subr.mxu1 %v175_v22  ;;  %v152_v32 = vld [vmem:[#allocation5 + $0x380] sm:$0xff]  ;;  %v95_v33 = vld [vmem:[#allocation5 + $0x1b8] sm:$0xff]  ;;  %v142_v34 = vld [vmem:[#allocation5 + $0x330] sm:$0xff] }
  0x26   :  { %403 = vmatpush1.msra.mxu0 %v150_v11  ;;  %470 = vmatpush1.msra.mxu1 %v174_v24  ;;  %v85_v35 = vld [vmem:[#allocation5 + $0x168] sm:$0xff]  ;;  %v84_v37 = vld [vmem:[#allocation5 + $0x160] sm:$0xff]  ;;  %v131_v38 = vld [vmem:[#allocation5 + $0x2d8] sm:$0xff] }
  0x27   :  { %404 = vmatprep.subr.mxu0 %v140_v13  ;;  %471 = vmatprep.subr.mxu1 %v164_v26  ;;  %v141_v36 = vld [vmem:[#allocation5 + $0x328] sm:$0xff]  ;;  %v74_v39 = vld [vmem:[#allocation5 + $0x110] sm:$0xff]  ;;  %v120_v42 = vld [vmem:[#allocation5 + $0x280] sm:$0xff] }
  0x28   :  { %405 = vmatpush1.msra.mxu0 %v139_v15  ;;  %472 = vmatpush1.msra.mxu1 %v163_v28  ;;  %v130_v40 = vld [vmem:[#allocation5 + $0x2d0] sm:$0xff]  ;;  %v73_v41 = vld [vmem:[#allocation5 + $0x108] sm:$0xff]  ;;  %v63_v43 = vld [vmem:[#allocation5 + $0xb8] sm:$0xff] }
  0x29   :  { %406 = vmatprep.subr.mxu0 %v129_v18  ;;  %473 = vmatprep.subr.mxu1 %v153_v30  ;;  %v119_v44 = vld [vmem:[#allocation5 + $0x278] sm:$0xff]  ;;  %v62_v45 = vld [vmem:[#allocation5 + $0xb0] sm:$0xff]  ;;  %v109_v46 = vld [vmem:[#allocation5 + $0x228] sm:$0xff] }
  0x2a   :  { %407 = vmatpush1.msra.mxu0 %v128_v20  ;;  %474 = vmatpush1.msra.mxu1 %v152_v32  ;;  %v52_v47 = vld [vmem:[#allocation5 + $0x60] sm:$0xff]  ;;  %v51_v49 = vld [vmem:[#allocation5 + $0x58] sm:$0xff]  ;;  %v98_v50 = vld [vmem:[#allocation5 + $0x1d0] sm:$0xff] }
  0x2b   :  { %408 = vmatprep.subr.mxu0 %v118_v23  ;;  %475 = vmatprep.subr.mxu1 %v142_v34  ;;  %v108_v48 = vld [vmem:[#allocation5 + $0x220] sm:$0xff]  ;;  %v41_v51 = vld [vmem:[#allocation5 + $0x8] sm:$0xff]  ;;  %v87_v54 = vld [vmem:[#allocation5 + $0x178] sm:$0xff] }
  0x2c   :  { %409 = vmatpush1.msra.mxu0 %v117_v25  ;;  %476 = vmatpush1.msra.mxu1 %v141_v36  ;;  %v97_v52 = vld [vmem:[#allocation5 + $0x1c8] sm:$0xff]  ;;  %v40_v53 = vld [vmem:[#allocation5] sm:$0xff]  ;;  %v382_v55 = vld [vmem:[#allocation5 + $0xab0] sm:$0xff] }
  0x2d   :  { %410 = vmatprep.subr.mxu0 %v107_v27  ;;  %477 = vmatprep.subr.mxu1 %v131_v38  ;;  %v86_v56 = vld [vmem:[#allocation5 + $0x170] sm:$0xff]  ;;  %v381_v57 = vld [vmem:[#allocation5 + $0xaa8] sm:$0xff]  ;;  %v76_v58 = vld [vmem:[#allocation5 + $0x120] sm:$0xff] }
  0x2e   :  { %411 = vmatpush1.msra.mxu0 %v106_v29  ;;  %478 = vmatpush1.msra.mxu1 %v130_v40  ;;  %v371_v59 = vld [vmem:[#allocation5 + $0xa58] sm:$0xff]  ;;  %v370_v61 = vld [vmem:[#allocation5 + $0xa50] sm:$0xff]  ;;  %v65_v62 = vld [vmem:[#allocation5 + $0xc8] sm:$0xff] }
  0x2f   :  { %412 = vmatprep.subr.mxu0 %v96_v31  ;;  %479 = vmatprep.subr.mxu1 %v120_v42  ;;  %v75_v60 = vld [vmem:[#allocation5 + $0x118] sm:$0xff]  ;;  %v360_v63 = vld [vmem:[#allocation5 + $0xa00] sm:$0xff]  ;;  %v54_v2 = vld [vmem:[#allocation5 + $0x70] sm:$0xff] }
  0x30   :  { %413 = vmatpush1.msra.mxu0 %v95_v33  ;;  %480 = vmatpush1.msra.mxu1 %v119_v44  ;;  %v64_v0 = vld [vmem:[#allocation5 + $0xc0] sm:$0xff]  ;;  %v359_v1 = vld [vmem:[#allocation5 + $0x9f8] sm:$0xff]  ;;  %v349_v3 = vld [vmem:[#allocation5 + $0x9a8] sm:$0xff] }
  0x31   :  { %414 = vmatprep.subr.mxu0 %v85_v35  ;;  %481 = vmatprep.subr.mxu1 %v109_v46  ;;  %v53_v4 = vld [vmem:[#allocation5 + $0x68] sm:$0xff]  ;;  %v348_v5 = vld [vmem:[#allocation5 + $0x9a0] sm:$0xff]  ;;  %v43_v6 = vld [vmem:[#allocation5 + $0x18] sm:$0xff] }
  0x32   :  { %415 = vmatpush1.msra.mxu0 %v84_v37  ;;  %482 = vmatpush1.msra.mxu1 %v108_v48  ;;  %v338_v7 = vld [vmem:[#allocation5 + $0x950] sm:$0xff]  ;;  %v337_v9 = vld [vmem:[#allocation5 + $0x948] sm:$0xff]  ;;  %v384_v10 = vld [vmem:[#allocation5 + $0xac0] sm:$0xff] }
  0x33   :  { %416 = vmatprep.subr.mxu0 %v74_v39  ;;  %483 = vmatprep.subr.mxu1 %v98_v50  ;;  %v42_v8 = vld [vmem:[#allocation5 + $0x10] sm:$0xff]  ;;  %v327_v11 = vld [vmem:[#allocation5 + $0x8f8] sm:$0xff]  ;;  %v373_v14 = vld [vmem:[#allocation5 + $0xa68] sm:$0xff] }
  0x34   :  { %417 = vmatpush1.msra.mxu0 %v73_v41  ;;  %484 = vmatpush1.msra.mxu1 %v97_v52  ;;  %v383_v12 = vld [vmem:[#allocation5 + $0xab8] sm:$0xff]  ;;  %v326_v13 = vld [vmem:[#allocation5 + $0x8f0] sm:$0xff]  ;;  %v316_v15 = vld [vmem:[#allocation5 + $0x8a0] sm:$0xff] }
  0x35   :  { %418 = vmatprep.subr.mxu0 %v63_v43  ;;  %485 = vmatprep.subr.mxu1 %v87_v54  ;;  %v977_v16 = vld [vmem:[#allocation2 + $0x8] sm:$0xff]  ;;  %v372_v18 = vld [vmem:[#allocation5 + $0xa60] sm:$0xff]  ;;  %v305_v19 = vld [vmem:[#allocation5 + $0x848] sm:$0xff] }
  0x36   :  { %419 = vmatpush1.msra.mxu0 %v62_v45  ;;  %486 = vmatpush1.msra.mxu1 %v86_v56  ;;  %v315_v17 = vld [vmem:[#allocation5 + $0x898] sm:$0xff]  ;;  %v362_v20 = vld [vmem:[#allocation5 + $0xa10] sm:$0xff]  ;;  %v304_v21 = vld [vmem:[#allocation5 + $0x840] sm:$0xff] }
  0x37   :  { %420 = vmatprep.subr.mxu0 %v52_v47  ;;  %487 = vmatprep.subr.mxu1 %v76_v58  ;;  %v361_v22 = vld [vmem:[#allocation5 + $0xa08] sm:$0xff]  ;;  %v294_v23 = vld [vmem:[#allocation5 + $0x7f0] sm:$0xff]  ;;  %v351_v24 = vld [vmem:[#allocation5 + $0x9b8] sm:$0xff] }
  0x38   :  { %421 = vmatpush1.msra.mxu0 %v51_v49  ;;  %488 = vmatpush1.msra.mxu1 %v75_v60  ;;  %v293_v25 = vld [vmem:[#allocation5 + $0x7e8] sm:$0xff]  ;;  %v350_v26 = vld [vmem:[#allocation5 + $0x9b0] sm:$0xff]  ;;  %v283_v27 = vld [vmem:[#allocation5 + $0x798] sm:$0xff] }
  0x39   :  { %422 = vmatprep.subr.mxu0 %v41_v51  ;;  %489 = vmatprep.subr.mxu1 %v65_v62  ;;  %v340_v28 = vld [vmem:[#allocation5 + $0x960] sm:$0xff]  ;;  %v282_v29 = vld [vmem:[#allocation5 + $0x790] sm:$0xff]  ;;  %v339_v30 = vld [vmem:[#allocation5 + $0x958] sm:$0xff] }
  0x3a   :  { %423 = vmatpush1.msra.mxu0 %v40_v53  ;;  %490 = vmatpush1.msra.mxu1 %v64_v0  ;;  %v272_v31 = vld [vmem:[#allocation5 + $0x740] sm:$0xff]  ;;  %v329_v32 = vld [vmem:[#allocation5 + $0x908] sm:$0xff]  ;;  %v271_v33 = vld [vmem:[#allocation5 + $0x738] sm:$0xff] }
  0x3b   :  { %424 = vmatprep.subr.mxu0 %v382_v55  ;;  %491 = vmatprep.subr.mxu1 %v54_v2  ;;  %v328_v34 = vld [vmem:[#allocation5 + $0x900] sm:$0xff]  ;;  %v261_v35 = vld [vmem:[#allocation5 + $0x6e8] sm:$0xff]  ;;  %v318_v36 = vld [vmem:[#allocation5 + $0x8b0] sm:$0xff] }
  0x3c   :  { %425 = vmatpush2.msra.mxu0 %v381_v57  ;;  %492 = vmatpush1.msra.mxu1 %v53_v4  ;;  %v260_v37 = vld [vmem:[#allocation5 + $0x6e0] sm:$0xff]  ;;  %v317_v38 = vld [vmem:[#allocation5 + $0x8a8] sm:$0xff]  ;;  %v250_v39 = vld [vmem:[#allocation5 + $0x690] sm:$0xff] }
  0x3d   :  { %426 = vmatprep.subr.mxu0 %v371_v59  ;;  %493 = vmatprep.subr.mxu1 %v43_v6  ;;  %v307_v40 = vld [vmem:[#allocation5 + $0x858] sm:$0xff]  ;;  %v249_v41 = vld [vmem:[#allocation5 + $0x688] sm:$0xff]  ;;  %v306_v42 = vld [vmem:[#allocation5 + $0x850] sm:$0xff] }
  0x3e   :  { %427 = vmatpush2.msra.mxu0 %v370_v61  ;;  %494 = vmatpush1.msra.mxu1 %v42_v8  ;;  %v239_v43 = vld [vmem:[#allocation5 + $0x638] sm:$0xff]  ;;  %v296_v44 = vld [vmem:[#allocation5 + $0x800] sm:$0xff]  ;;  %v238_v45 = vld [vmem:[#allocation5 + $0x630] sm:$0xff] }
  0x3f   :  { %428 = vmatprep.subr.mxu0 %v360_v63  ;;  %495 = vmatprep.subr.mxu1 %v384_v10  ;;  %v295_v46 = vld [vmem:[#allocation5 + $0x7f8] sm:$0xff]  ;;  %v228_v47 = vld [vmem:[#allocation5 + $0x5e0] sm:$0xff]  ;;  %v285_v48 = vld [vmem:[#allocation5 + $0x7a8] sm:$0xff] }
  0x40   :  { %429 = vmatpush2.msra.mxu0 %v359_v1  ;;  %496 = vmatpush2.msra.mxu1 %v383_v12  ;;  %v227_v49 = vld [vmem:[#allocation5 + $0x5d8] sm:$0xff]  ;;  %v284_v50 = vld [vmem:[#allocation5 + $0x7a0] sm:$0xff]  ;;  %v217_v51 = vld [vmem:[#allocation5 + $0x588] sm:$0xff] }
  0x41   :  { %430 = vmatprep.subr.mxu0 %v349_v3  ;;  %497 = vmatprep.subr.mxu1 %v373_v14  ;;  %v274_v52 = vld [vmem:[#allocation5 + $0x750] sm:$0xff]  ;;  %v216_v53 = vld [vmem:[#allocation5 + $0x580] sm:$0xff]  ;;  %v273_v54 = vld [vmem:[#allocation5 + $0x748] sm:$0xff] }
  0x42   :  { %431 = vmatpush2.msra.mxu0 %v348_v5  ;;  %456 = vmatprep.mubr.f32.mxu0 %v977_v16  ;;  %v980_v55 = vld [vmem:[#allocation2] sm:$0xff]  ;;  %v209_v57 = vld [vmem:[#allocation5 + $0x548] sm:$0xff]  ;;  %v263_v58 = vld [vmem:[#allocation5 + $0x6f8] sm:$0xff] }
  0x43   :  { %432 = vmatprep.subr.mxu0 %v338_v7  ;;  %498 = vmatpush2.msra.mxu1 %v372_v18  ;;  %v210_v56 = vld [vmem:[#allocation5 + $0x550] sm:$0xff]  ;;  %v199_v59 = vld [vmem:[#allocation5 + $0x4f8] sm:$0xff]  ;;  %v252_v62 = vld [vmem:[#allocation5 + $0x6a0] sm:$0xff] }
  0x44   :  { %433 = vmatpush2.msra.mxu0 %v337_v9  ;;  %499 = vmatprep.subr.mxu1 %v362_v20  ;;  %v262_v60 = vld [vmem:[#allocation5 + $0x6f0] sm:$0xff]  ;;  %v188_v63 = vld [vmem:[#allocation5 + $0x4a0] sm:$0xff]  ;;  %v251_v0 = vld [vmem:[#allocation5 + $0x698] sm:$0xff] }
  0x45   :  { %434 = vmatprep.subr.mxu0 %v327_v11  ;;  %500 = vmatpush2.msra.mxu1 %v361_v22  ;;  %v198_v61 = vld [vmem:[#allocation5 + $0x4f0] sm:$0xff]  ;;  %v187_v1 = vld [vmem:[#allocation5 + $0x498] sm:$0xff]  ;;  %v241_v2 = vld [vmem:[#allocation5 + $0x648] sm:$0xff] }
  0x46   :  { %435 = vmatpush2.msra.mxu0 %v326_v13  ;;  %501 = vmatprep.subr.mxu1 %v351_v24  ;;  %v177_v3 = vld [vmem:[#allocation5 + $0x448] sm:$0xff]  ;;  %v240_v4 = vld [vmem:[#allocation5 + $0x640] sm:$0xff]  ;;  %v230_v6 = vld [vmem:[#allocation5 + $0x5f0] sm:$0xff] }
  0x47   :  { %436 = vmatprep.subr.mxu0 %v316_v15  ;;  %502 = vmatpush2.msra.mxu1 %v350_v26  ;;  %v176_v5 = vld [vmem:[#allocation5 + $0x440] sm:$0xff]  ;;  %v166_v7 = vld [vmem:[#allocation5 + $0x3f0] sm:$0xff]  ;;  %v229_v8 = vld [vmem:[#allocation5 + $0x5e8] sm:$0xff] }
  0x48   :  { %437 = vmatpush2.msra.mxu0 %v315_v17  ;;  %503 = vmatprep.subr.mxu1 %v340_v28  ;;  %v165_v9 = vld [vmem:[#allocation5 + $0x3e8] sm:$0xff]  ;;  %v219_v10 = vld [vmem:[#allocation5 + $0x598] sm:$0xff]  ;;  %v218_v12 = vld [vmem:[#allocation5 + $0x590] sm:$0xff] }
  0x49   :  { %438 = vmatprep.subr.mxu0 %v305_v19  ;;  %504 = vmatpush2.msra.mxu1 %v339_v30  ;;  %v155_v11 = vld [vmem:[#allocation5 + $0x398] sm:$0xff]  ;;  %v154_v13 = vld [vmem:[#allocation5 + $0x390] sm:$0xff]  ;;  %v144_v14 = vld [vmem:[#allocation5 + $0x340] sm:$0xff] }
  0x4a   :  { %439 = vmatpush2.msra.mxu0 %v304_v21  ;;  %505 = vmatprep.subr.mxu1 %v329_v32  ;;  %v212_v15 = vld [vmem:[#allocation5 + $0x560] sm:$0xff]  ;;  %v143_v17 = vld [vmem:[#allocation5 + $0x338] sm:$0xff]  ;;  %v133_v18 = vld [vmem:[#allocation5 + $0x2e8] sm:$0xff] }
  0x4b   :  { %440 = vmatprep.subr.mxu0 %v294_v23  ;;  %506 = vmatpush2.msra.mxu1 %v328_v34  ;;  %v211_v19 = vld [vmem:[#allocation5 + $0x558] sm:$0xff]  ;;  %v132_v20 = vld [vmem:[#allocation5 + $0x2e0] sm:$0xff]  ;;  %v201_v21 = vld [vmem:[#allocation5 + $0x508] sm:$0xff] }
  0x4c   :  { %441 = vmatpush2.msra.mxu0 %v293_v25  ;;  %507 = vmatprep.subr.mxu1 %v318_v36  ;;  %v122_v22 = vld [vmem:[#allocation5 + $0x290] sm:$0xff]  ;;  %v200_v23 = vld [vmem:[#allocation5 + $0x500] sm:$0xff]  ;;  %v121_v24 = vld [vmem:[#allocation5 + $0x288] sm:$0xff] }
  0x4d   :  { %442 = vmatprep.subr.mxu0 %v283_v27  ;;  %508 = vmatpush2.msra.mxu1 %v317_v38  ;;  %v190_v25 = vld [vmem:[#allocation5 + $0x4b0] sm:$0xff]  ;;  %v111_v26 = vld [vmem:[#allocation5 + $0x238] sm:$0xff]  ;;  %v189_v27 = vld [vmem:[#allocation5 + $0x4a8] sm:$0xff] }
  0x4e   :  { %443 = vmatpush2.msra.mxu0 %v282_v29  ;;  %509 = vmatprep.subr.mxu1 %v307_v40  ;;  %v110_v28 = vld [vmem:[#allocation5 + $0x230] sm:$0xff]  ;;  %v179_v29 = vld [vmem:[#allocation5 + $0x458] sm:$0xff]  ;;  %v100_v30 = vld [vmem:[#allocation5 + $0x1e0] sm:$0xff] }
  0x4f   :  { %444 = vmatprep.subr.mxu0 %v272_v31  ;;  %510 = vmatpush2.msra.mxu1 %v306_v42  ;;  %v178_v31 = vld [vmem:[#allocation5 + $0x450] sm:$0xff]  ;;  %v99_v32 = vld [vmem:[#allocation5 + $0x1d8] sm:$0xff]  ;;  %v89_v34 = vld [vmem:[#allocation5 + $0x188] sm:$0xff] }
  0x50   :  { %445 = vmatpush2.msra.mxu0 %v271_v33  ;;  %511 = vmatprep.subr.mxu1 %v296_v44  ;;  %v168_v33 = vld [vmem:[#allocation5 + $0x400] sm:$0xff]  ;;  %v78_v38 = vld [vmem:[#allocation5 + $0x130] sm:$0xff]  ;;  %v77_v40 = vld [vmem:[#allocation5 + $0x128] sm:$0xff] }
  0x51   :  { %446 = vmatprep.subr.mxu0 %v261_v35  ;;  %512 = vmatpush2.msra.mxu1 %v295_v46  ;;  %v167_v35 = vld [vmem:[#allocation5 + $0x3f8] sm:$0xff]  ;;  %v88_v36 = vld [vmem:[#allocation5 + $0x180] sm:$0xff]  ;;  %v66_v44 = vld [vmem:[#allocation5 + $0xd0] sm:$0xff] }
  0x52   :  { %447 = vmatpush2.msra.mxu0 %v260_v37  ;;  %513 = vmatprep.subr.mxu1 %v285_v48  ;;  %v157_v37 = vld [vmem:[#allocation5 + $0x3a8] sm:$0xff]  ;;  %v67_v42 = vld [vmem:[#allocation5 + $0xd8] sm:$0xff]  ;;  %v56_v46 = vld [vmem:[#allocation5 + $0x80] sm:$0xff] }
  0x53   :  { %448 = vmatprep.subr.mxu0 %v250_v39  ;;  %514 = vmatpush2.msra.mxu1 %v284_v50  ;;  %v156_v39 = vld [vmem:[#allocation5 + $0x3a0] sm:$0xff]  ;;  %v55_v48 = vld [vmem:[#allocation5 + $0x78] sm:$0xff]  ;;  %v45_v50 = vld [vmem:[#allocation5 + $0x28] sm:$0xff] }
  0x54   :  { %449 = vmatpush2.msra.mxu0 %v249_v41  ;;  %515 = vmatprep.subr.mxu1 %v274_v52  ;;  %v146_v41 = vld [vmem:[#allocation5 + $0x350] sm:$0xff]  ;;  %v44_v52 = vld [vmem:[#allocation5 + $0x20] sm:$0xff] }
  0x55   :  { %450 = vmatprep.subr.mxu0 %v239_v43  ;;  %516 = vmatpush2.msra.mxu1 %v273_v54  ;;  %v145_v43 = vld [vmem:[#allocation5 + $0x348] sm:$0xff]  ;;  %v386_v54 = vld [vmem:[#allocation5 + $0xad0] sm:$0xff] }
  0x56   :  { %451 = vmatpush2.msra.mxu0 %v238_v45  ;;  %517 = vmatprep.subr.mxu1 %v263_v58  ;;  %v135_v45 = vld [vmem:[#allocation5 + $0x2f8] sm:$0xff]  ;;  %v102_v58 = vld [vmem:[#allocation5 + $0x1f0] sm:$0xff] }
  0x57   :  { %452 = vmatprep.subr.mxu0 %v228_v47  ;;  %518 = vmatpush2.msra.mxu1 %v262_v60  ;;  %v134_v47 = vld [vmem:[#allocation5 + $0x2f0] sm:$0xff]  ;;  %v101_v60 = vld [vmem:[#allocation5 + $0x1e8] sm:$0xff] }
  0x58   :  { %453 = vmatpush2.msra.mxu0 %v227_v49  ;;  %519 = vmatprep.subr.mxu1 %v252_v62  ;;  %v124_v49 = vld [vmem:[#allocation5 + $0x2a0] sm:$0xff]  ;;  %v91_v62 = vld [vmem:[#allocation5 + $0x198] sm:$0xff] }
  0x59   :  { %454 = vmatprep.subr.mxu0 %v217_v51  ;;  %520 = vmatpush2.msra.mxu1 %v251_v0  ;;  %v123_v51 = vld [vmem:[#allocation5 + $0x298] sm:$0xff]  ;;  %v90_v0 = vld [vmem:[#allocation5 + $0x190] sm:$0xff] }
  0x5a   :  { %455 = vmatpush2.msra.mxu0 %v216_v53  ;;  %521 = vmatprep.subr.mxu1 %v241_v2  ;;  %v113_v53 = vld [vmem:[#allocation5 + $0x248] sm:$0xff]  ;;  %v80_v2 = vld [vmem:[#allocation5 + $0x140] sm:$0xff] }
  0x5b   :  { %457 = vmatmul.mubr.f32.vlgmr.msra.gmra.mxu0 %v980_v55  ;;  %534 = vmatprep.subr.mxu0 %v210_v56  ;;  %v112_v56 = vld [vmem:[#allocation5 + $0x240] sm:$0xff] }
  0x5c   :  { %535 = vmatpush1.msra.mxu0 %v209_v57  ;;  %522 = vmatpush2.msra.mxu1 %v240_v4  ;;  %v385_v57 = vld [vmem:[#allocation5 + $0xac8] sm:$0xff]  ;;  %v79_v4 = vld [vmem:[#allocation5 + $0x138] sm:$0xff] }
  0x5d   :  { %536 = vmatprep.subr.mxu0 %v199_v59  ;;  %523 = vmatprep.subr.mxu1 %v230_v6  ;;  %v375_v59 = vld [vmem:[#allocation5 + $0xa78] sm:$0xff]  ;;  %v69_v6 = vld [vmem:[#allocation5 + $0xe8] sm:$0xff] }
  0x5e   :  { %537 = vmatpush1.msra.mxu0 %v198_v61  ;;  %524 = vmatpush2.msra.mxu1 %v229_v8  ;;  %v374_v61 = vld [vmem:[#allocation5 + $0xa70] sm:$0xff]  ;;  %v68_v8 = vld [vmem:[#allocation5 + $0xe0] sm:$0xff] }
  0x5f   :  { %538 = vmatprep.subr.mxu0 %v188_v63  ;;  %525 = vmatprep.subr.mxu1 %v219_v10  ;;  %v364_v63 = vld [vmem:[#allocation5 + $0xa20] sm:$0xff]  ;;  %v58_v10 = vld [vmem:[#allocation5 + $0x90] sm:$0xff] }
  0x60   :  { %539 = vmatpush1.msra.mxu0 %v187_v1  ;;  %526 = vmatpush2.msra.mxu1 %v218_v12  ;;  %v363_v1 = vld [vmem:[#allocation5 + $0xa18] sm:$0xff]  ;;  %v57_v12 = vld [vmem:[#allocation5 + $0x88] sm:$0xff] }
  0x61   :  { %540 = vmatprep.subr.mxu0 %v177_v3  ;;  %527 = vmatprep.mubr.f32.mxu1 %v977_v16  ;;  %v353_v3 = vld [vmem:[#allocation5 + $0x9c8] sm:$0xff] }
  0x62   :  { %541 = vmatpush1.msra.mxu0 %v176_v5  ;;  %605 = vmatprep.subr.mxu1 %v212_v15  ;;  %v352_v5 = vld [vmem:[#allocation5 + $0x9c0] sm:$0xff] }
  0x63   :  { %542 = vmatprep.subr.mxu0 %v166_v7  ;;  %528 = vmatmul.mubr.f32.vlgmr.msra.gmra.mxu1 %v980_v55  ;;  %v342_v7 = vld [vmem:[#allocation5 + $0x970] sm:$0xff]  ;;  %v320_v15 = vld [vmem:[#allocation5 + $0x8c0] sm:$0xff] }
  0x64   :  { %543 = vmatpush1.msra.mxu0 %v165_v9  ;;  %606 = vmatpush1.msra.mxu1 %v211_v19  ;;  %v341_v9 = vld [vmem:[#allocation5 + $0x968] sm:$0xff]  ;;  %v388_v19 = vld [vmem:[#allocation5 + $0xae0] sm:$0xff] }
  0x65   :  { %544 = vmatprep.subr.mxu0 %v155_v11  ;;  %607 = vmatprep.subr.mxu1 %v201_v21  ;;  %v331_v11 = vld [vmem:[#allocation5 + $0x918] sm:$0xff] }
  0x66   :  { %545 = vmatpush1.msra.mxu0 %v154_v13  ;;  %608 = vmatpush1.msra.mxu1 %v200_v23  ;;  %v330_v13 = vld [vmem:[#allocation5 + $0x910] sm:$0xff]  ;;  %v387_v21 = vld [vmem:[#allocation5 + $0xad8] sm:$0xff]  ;;  %v377_v23 = vld [vmem:[#allocation5 + $0xa88] sm:$0xff] }
  0x67   :  { %546 = vmatprep.subr.mxu0 %v144_v14  ;;  %609 = vmatprep.subr.mxu1 %v190_v25  ;;  %v47_v14 = vld [vmem:[#allocation5 + $0x38] sm:$0xff]  ;;  %v297_v25 = vld [vmem:[#allocation5 + $0x808] sm:$0xff] }
  0x68   :  { %547 = vmatpush1.msra.mxu0 %v143_v17  ;;  %610 = vmatpush1.msra.mxu1 %v189_v27  ;;  %v46_v17 = vld [vmem:[#allocation5 + $0x30] sm:$0xff]  ;;  %v287_v27 = vld [vmem:[#allocation5 + $0x7b8] sm:$0xff] }
  0x69   :  { %548 = vmatprep.subr.mxu0 %v133_v18  ;;  %611 = vmatprep.subr.mxu1 %v179_v29  ;;  %v319_v18 = vld [vmem:[#allocation5 + $0x8b8] sm:$0xff]  ;;  %v286_v29 = vld [vmem:[#allocation5 + $0x7b0] sm:$0xff] }
  0x6a   :  { %549 = vmatpush1.msra.mxu0 %v132_v20  ;;  %612 = vmatpush1.msra.mxu1 %v178_v31  ;;  %v309_v20 = vld [vmem:[#allocation5 + $0x868] sm:$0xff]  ;;  %v276_v31 = vld [vmem:[#allocation5 + $0x760] sm:$0xff] }
  0x6b   :  { %550 = vmatprep.subr.mxu0 %v122_v22  ;;  %613 = vmatprep.subr.mxu1 %v168_v33  ;;  %v308_v22 = vld [vmem:[#allocation5 + $0x860] sm:$0xff]  ;;  %v275_v33 = vld [vmem:[#allocation5 + $0x758] sm:$0xff] }
  0x6c   :  { %551 = vmatpush1.msra.mxu0 %v121_v24  ;;  %614 = vmatpush1.msra.mxu1 %v167_v35  ;;  %v298_v24 = vld [vmem:[#allocation5 + $0x810] sm:$0xff]  ;;  %v265_v35 = vld [vmem:[#allocation5 + $0x708] sm:$0xff] }
  0x6d   :  { %552 = vmatprep.subr.mxu0 %v111_v26  ;;  %615 = vmatprep.subr.mxu1 %v157_v37  ;;  %v376_v26 = vld [vmem:[#allocation5 + $0xa80] sm:$0xff] }
  0x6e   :  { %553 = vmatpush1.msra.mxu0 %v110_v28  ;;  %616 = vmatpush1.msra.mxu1 %v156_v39  ;;  %v366_v28 = vld [vmem:[#allocation5 + $0xa30] sm:$0xff]  ;;  %v264_v37 = vld [vmem:[#allocation5 + $0x700] sm:$0xff] }
  0x6f   :  { %554 = vmatprep.subr.mxu0 %v100_v30  ;;  %617 = vmatprep.subr.mxu1 %v146_v41  ;;  %v365_v30 = vld [vmem:[#allocation5 + $0xa28] sm:$0xff]  ;;  %v254_v39 = vld [vmem:[#allocation5 + $0x6b0] sm:$0xff] }
  0x70   :  { %555 = vmatpush1.msra.mxu0 %v99_v32  ;;  %618 = vmatpush1.msra.mxu1 %v145_v43  ;;  %v355_v32 = vld [vmem:[#allocation5 + $0x9d8] sm:$0xff]  ;;  %v253_v41 = vld [vmem:[#allocation5 + $0x6a8] sm:$0xff] }
  0x71   :  { %556 = vmatprep.subr.mxu0 %v89_v34  ;;  %619 = vmatprep.subr.mxu1 %v135_v45  ;;  %v354_v34 = vld [vmem:[#allocation5 + $0x9d0] sm:$0xff]  ;;  %v243_v43 = vld [vmem:[#allocation5 + $0x658] sm:$0xff] }
  0x72   :  { %557 = vmatpush1.msra.mxu0 %v88_v36  ;;  %620 = vmatpush1.msra.mxu1 %v134_v47  ;;  %v344_v36 = vld [vmem:[#allocation5 + $0x980] sm:$0xff]  ;;  %v242_v45 = vld [vmem:[#allocation5 + $0x650] sm:$0xff] }
  0x73   :  { %558 = vmatprep.subr.mxu0 %v78_v38  ;;  %621 = vmatprep.subr.mxu1 %v124_v49  ;;  %v343_v38 = vld [vmem:[#allocation5 + $0x978] sm:$0xff]  ;;  %v232_v47 = vld [vmem:[#allocation5 + $0x600] sm:$0xff] }
  0x74   :  { %559 = vmatpush1.msra.mxu0 %v77_v40  ;;  %622 = vmatpush1.msra.mxu1 %v123_v51  ;;  %v333_v40 = vld [vmem:[#allocation5 + $0x928] sm:$0xff]  ;;  %v231_v49 = vld [vmem:[#allocation5 + $0x5f8] sm:$0xff] }
  0x75   :  { %560 = vmatprep.subr.mxu0 %v67_v42  ;;  %623 = vmatprep.subr.mxu1 %v113_v53  ;;  %v332_v42 = vld [vmem:[#allocation5 + $0x920] sm:$0xff]  ;;  %v221_v51 = vld [vmem:[#allocation5 + $0x5a8] sm:$0xff] }
  0x76   :  { %561 = vmatpush1.msra.mxu0 %v66_v44  ;;  %624 = vmatpush1.msra.mxu1 %v112_v56  ;;  %v322_v44 = vld [vmem:[#allocation5 + $0x8d0] sm:$0xff]  ;;  %v220_v53 = vld [vmem:[#allocation5 + $0x5a0] sm:$0xff] }
  0x77   :  { %562 = vmatprep.subr.mxu0 %v56_v46  ;;  %625 = vmatprep.subr.mxu1 %v102_v58  ;;  %v321_v46 = vld [vmem:[#allocation5 + $0x8c8] sm:$0xff]  ;;  %v214_v56 = vld [vmem:[#allocation5 + $0x570] sm:$0xff] }
  0x78   :  { %563 = vmatpush1.msra.mxu0 %v55_v48  ;;  %626 = vmatpush1.msra.mxu1 %v101_v60  ;;  %v311_v48 = vld [vmem:[#allocation5 + $0x878] sm:$0xff]  ;;  %v289_v58 = vld [vmem:[#allocation5 + $0x7c8] sm:$0xff]  ;;  %v288_v60 = vld [vmem:[#allocation5 + $0x7c0] sm:$0xff] }
  0x79   :  { %564 = vmatprep.subr.mxu0 %v45_v50  ;;  %627 = vmatprep.subr.mxu1 %v91_v62  ;;  %v310_v50 = vld [vmem:[#allocation5 + $0x870] sm:$0xff] }
  0x7a   :  { %565 = vmatpush1.msra.mxu0 %v44_v52  ;;  %628 = vmatpush1.msra.mxu1 %v90_v0  ;;  %v300_v52 = vld [vmem:[#allocation5 + $0x820] sm:$0xff]  ;;  %v278_v62 = vld [vmem:[#allocation5 + $0x770] sm:$0xff]  ;;  %v277_v0 = vld [vmem:[#allocation5 + $0x768] sm:$0xff] }
  0x7b   :  { %566 = vmatprep.subr.mxu0 %v386_v54  ;;  %629 = vmatprep.subr.mxu1 %v80_v2  ;;  %v299_v54 = vld [vmem:[#allocation5 + $0x818] sm:$0xff] }
  0x7c   :  { %567 = vmatpush2.msra.mxu0 %v385_v57  ;;  %630 = vmatpush1.msra.mxu1 %v79_v4  ;;  %v213_v57 = vld [vmem:[#allocation5 + $0x568] sm:$0xff]  ;;  %v267_v2 = vld [vmem:[#allocation5 + $0x718] sm:$0xff]  ;;  %v266_v4 = vld [vmem:[#allocation5 + $0x710] sm:$0xff] }
  0x7d   :  { %568 = vmatprep.subr.mxu0 %v375_v59  ;;  %631 = vmatprep.subr.mxu1 %v69_v6  ;;  %v203_v59 = vld [vmem:[#allocation5 + $0x518] sm:$0xff]  ;;  %v256_v6 = vld [vmem:[#allocation5 + $0x6c0] sm:$0xff] }
  0x7e   :  { %569 = vmatpush2.msra.mxu0 %v374_v61  ;;  %632 = vmatpush1.msra.mxu1 %v68_v8  ;;  %v202_v61 = vld [vmem:[#allocation5 + $0x510] sm:$0xff]  ;;  %v255_v8 = vld [vmem:[#allocation5 + $0x6b8] sm:$0xff] }
  0x7f   :  { %570 = vmatprep.subr.mxu0 %v364_v63  ;;  %633 = vmatprep.subr.mxu1 %v58_v10  ;;  %v192_v63 = vld [vmem:[#allocation5 + $0x4c0] sm:$0xff]  ;;  %v245_v10 = vld [vmem:[#allocation5 + $0x668] sm:$0xff] }
  0x80   :  { %571 = vmatpush2.msra.mxu0 %v363_v1  ;;  %634 = vmatpush1.msra.mxu1 %v57_v12  ;;  %v191_v1 = vld [vmem:[#allocation5 + $0x4b8] sm:$0xff]  ;;  %v244_v12 = vld [vmem:[#allocation5 + $0x660] sm:$0xff] }
  0x81   :  { %572 = vmatprep.subr.mxu0 %v353_v3  ;;  %635 = vmatprep.subr.mxu1 %v47_v14  ;;  %v181_v3 = vld [vmem:[#allocation5 + $0x468] sm:$0xff]  ;;  %v234_v14 = vld [vmem:[#allocation5 + $0x610] sm:$0xff] }
  0x82   :  { %573 = vmatpush2.msra.mxu0 %v352_v5  ;;  %636 = vmatpush1.msra.mxu1 %v46_v17  ;;  %v180_v5 = vld [vmem:[#allocation5 + $0x460] sm:$0xff]  ;;  %v233_v17 = vld [vmem:[#allocation5 + $0x608] sm:$0xff] }
  0x83   :  { %574 = vmatprep.subr.mxu0 %v342_v7  ;;  %637 = vmatprep.subr.mxu1 %v388_v19  ;;  %v170_v7 = vld [vmem:[#allocation5 + $0x410] sm:$0xff]  ;;  %v223_v19 = vld [vmem:[#allocation5 + $0x5b8] sm:$0xff] }
  0x84   :  { %575 = vmatpush2.msra.mxu0 %v341_v9  ;;  %638 = vmatpush2.msra.mxu1 %v387_v21  ;;  %v169_v9 = vld [vmem:[#allocation5 + $0x408] sm:$0xff]  ;;  %v222_v21 = vld [vmem:[#allocation5 + $0x5b0] sm:$0xff] }
  0x85   :  { %576 = vmatprep.subr.mxu0 %v331_v11  ;;  %639 = vmatprep.subr.mxu1 %v377_v23  ;;  %v159_v11 = vld [vmem:[#allocation5 + $0x3b8] sm:$0xff]  ;;  %v126_v23 = vld [vmem:[#allocation5 + $0x2b0] sm:$0xff] }
  0x86   :  { %577 = vmatpush2.msra.mxu0 %v330_v13  ;;  %598 = vmatprep.mubr.f32.mxu0 %v977_v16  ;;  %v158_v13 = vld [vmem:[#allocation5 + $0x3b0] sm:$0xff] }
  0x87   :  { %578 = vmatprep.subr.mxu0 %v320_v15  ;;  %640 = vmatpush2.msra.mxu1 %v376_v26  ;;  %v148_v15 = vld [vmem:[#allocation5 + $0x360] sm:$0xff]  ;;  %v115_v26 = vld [vmem:[#allocation5 + $0x258] sm:$0xff] }
  0x88   :  { %579 = vmatpush2.msra.mxu0 %v319_v18  ;;  %641 = vmatprep.subr.mxu1 %v366_v28  ;;  %v147_v18 = vld [vmem:[#allocation5 + $0x358] sm:$0xff]  ;;  %v114_v28 = vld [vmem:[#allocation5 + $0x250] sm:$0xff] }
  0x89   :  { %580 = vmatprep.subr.mxu0 %v309_v20  ;;  %642 = vmatpush2.msra.mxu1 %v365_v30  ;;  %v137_v20 = vld [vmem:[#allocation5 + $0x308] sm:$0xff]  ;;  %v104_v30 = vld [vmem:[#allocation5 + $0x200] sm:$0xff] }
  0x8a   :  { %581 = vmatpush2.msra.mxu0 %v308_v22  ;;  %643 = vmatprep.subr.mxu1 %v355_v32  ;;  %v136_v22 = vld [vmem:[#allocation5 + $0x300] sm:$0xff]  ;;  %v103_v32 = vld [vmem:[#allocation5 + $0x1f8] sm:$0xff] }
  0x8b   :  { %582 = vmatprep.subr.mxu0 %v298_v24  ;;  %644 = vmatpush2.msra.mxu1 %v354_v34  ;;  %v391_v24 = vld [vmem:[#allocation5 + $0xaf8] sm:$0xff]  ;;  %v93_v34 = vld [vmem:[#allocation5 + $0x1a8] sm:$0xff] }
  0x8c   :  { %583 = vmatpush2.msra.mxu0 %v297_v25  ;;  %645 = vmatprep.subr.mxu1 %v344_v36  ;;  %v125_v25 = vld [vmem:[#allocation5 + $0x2a8] sm:$0xff]  ;;  %v358_v36 = vld [vmem:[#allocation5 + $0x9f0] sm:$0xff] }
  0x8d   :  { %584 = vmatprep.subr.mxu0 %v287_v27  ;;  %646 = vmatpush2.msra.mxu1 %v343_v38  ;;  %v215_v27 = vld [vmem:[#allocation5 + $0x578] sm:$0xff]  ;;  %v182_v38 = vld [vmem:[#allocation5 + $0x470] sm:$0xff] }
  0x8e   :  { %585 = vmatpush2.msra.mxu0 %v286_v29  ;;  %647 = vmatprep.subr.mxu1 %v333_v40  ;;  %v380_v29 = vld [vmem:[#allocation5 + $0xaa0] sm:$0xff]  ;;  %v347_v40 = vld [vmem:[#allocation5 + $0x998] sm:$0xff] }
  0x8f   :  { %586 = vmatprep.subr.mxu0 %v276_v31  ;;  %648 = vmatpush2.msra.mxu1 %v332_v42  ;;  %v204_v31 = vld [vmem:[#allocation5 + $0x520] sm:$0xff]  ;;  %v171_v42 = vld [vmem:[#allocation5 + $0x418] sm:$0xff] }
  0x90   :  { %587 = vmatpush2.msra.mxu0 %v275_v33  ;;  %649 = vmatprep.subr.mxu1 %v322_v44  ;;  %v369_v33 = vld [vmem:[#allocation5 + $0xa48] sm:$0xff]  ;;  %v336_v44 = vld [vmem:[#allocation5 + $0x940] sm:$0xff] }
  0x91   :  { %588 = vmatprep.subr.mxu0 %v265_v35  ;;  %650 = vmatpush2.msra.mxu1 %v321_v46  ;;  %v193_v35 = vld [vmem:[#allocation5 + $0x4c8] sm:$0xff]  ;;  %v160_v46 = vld [vmem:[#allocation5 + $0x3c0] sm:$0xff] }
  0x92   :  { %589 = vmatpush2.msra.mxu0 %v264_v37  ;;  %651 = vmatprep.subr.mxu1 %v311_v48  ;;  %v82_v37 = vld [vmem:[#allocation5 + $0x150] sm:$0xff]  ;;  %v325_v48 = vld [vmem:[#allocation5 + $0x8e8] sm:$0xff] }
  0x93   :  { %590 = vmatprep.subr.mxu0 %v254_v39  ;;  %652 = vmatpush2.msra.mxu1 %v310_v50  ;;  %v81_v39 = vld [vmem:[#allocation5 + $0x148] sm:$0xff] }
  0x94   :  { %591 = vmatpush2.msra.mxu0 %v253_v41  ;;  %653 = vmatprep.subr.mxu1 %v300_v52  ;;  %v71_v41 = vld [vmem:[#allocation5 + $0xf8] sm:$0xff]  ;;  %v149_v50 = vld [vmem:[#allocation5 + $0x368] sm:$0xff]  ;;  %v314_v52 = vld [vmem:[#allocation5 + $0x890] sm:$0xff] }
  0x95   :  { %592 = vmatprep.subr.mxu0 %v243_v43  ;;  %654 = vmatpush2.msra.mxu1 %v299_v54  ;;  %v70_v43 = vld [vmem:[#allocation5 + $0xf0] sm:$0xff] }
  0x96   :  { %593 = vmatpush2.msra.mxu0 %v242_v45  ;;  %655 = vmatprep.subr.mxu1 %v289_v58  ;;  %v60_v45 = vld [vmem:[#allocation5 + $0xa0] sm:$0xff]  ;;  %v138_v54 = vld [vmem:[#allocation5 + $0x310] sm:$0xff]  ;;  %v379_v58 = vld [vmem:[#allocation5 + $0xa98] sm:$0xff] }
  0x97   :  { %594 = vmatprep.subr.mxu0 %v232_v47  ;;  %656 = vmatpush2.msra.mxu1 %v288_v60  ;;  %v59_v47 = vld [vmem:[#allocation5 + $0x98] sm:$0xff]  ;;  %v378_v60 = vld [vmem:[#allocation5 + $0xa90] sm:$0xff] }
  0x98   :  { %595 = vmatpush2.msra.mxu0 %v231_v49  ;;  %657 = vmatprep.subr.mxu1 %v278_v62  ;;  %v49_v49 = vld [vmem:[#allocation5 + $0x48] sm:$0xff]  ;;  %v368_v62 = vld [vmem:[#allocation5 + $0xa40] sm:$0xff] }
  0x99   :  { %596 = vmatprep.subr.mxu0 %v221_v51  ;;  %658 = vmatpush2.msra.mxu1 %v277_v0  ;;  %v48_v51 = vld [vmem:[#allocation5 + $0x40] sm:$0xff]  ;;  %v367_v0 = vld [vmem:[#allocation5 + $0xa38] sm:$0xff] }
  0x9a   :  { %597 = vmatpush2.msra.mxu0 %v220_v53  ;;  %659 = vmatprep.subr.mxu1 %v267_v2  ;;  %v390_v53 = vld [vmem:[#allocation5 + $0xaf0] sm:$0xff]  ;;  %v357_v2 = vld [vmem:[#allocation5 + $0x9e8] sm:$0xff] }
  0x9b   :  { %599 = vmatmul.mubr.f32.vlgmr.msra.gmra.mxu0 %v980_v55  ;;  %676 = vmatprep.subr.mxu0 %v214_v56  ;;  %v389_v56 = vld [vmem:[#allocation5 + $0xae8] sm:$0xff] }
  0x9c   :  { %677 = vmatpush1.msra.mxu0 %v213_v57  ;;  %660 = vmatpush2.msra.mxu1 %v266_v4  ;;  %v303_v57 = vld [vmem:[#allocation5 + $0x838] sm:$0xff]  ;;  %v356_v4 = vld [vmem:[#allocation5 + $0x9e0] sm:$0xff] }
  0x9d   :  { %678 = vmatprep.subr.mxu0 %v203_v59  ;;  %661 = vmatprep.subr.mxu1 %v256_v6  ;;  %v127_v59 = vld [vmem:[#allocation5 + $0x2b8] sm:$0xff]  ;;  %v346_v6 = vld [vmem:[#allocation5 + $0x990] sm:$0xff] }
  0x9e   :  { %679 = vmatpush1.msra.mxu0 %v202_v61  ;;  %662 = vmatpush2.msra.mxu1 %v255_v8  ;;  %v292_v61 = vld [vmem:[#allocation5 + $0x7e0] sm:$0xff]  ;;  %v345_v8 = vld [vmem:[#allocation5 + $0x988] sm:$0xff] }
  0x9f   :  { %680 = vmatprep.subr.mxu0 %v192_v63  ;;  %663 = vmatprep.subr.mxu1 %v245_v10  ;;  %v116_v63 = vld [vmem:[#allocation5 + $0x260] sm:$0xff]  ;;  %v335_v10 = vld [vmem:[#allocation5 + $0x938] sm:$0xff] }
  0xa0   :  { %681 = vmatpush1.msra.mxu0 %v191_v1  ;;  %664 = vmatpush2.msra.mxu1 %v244_v12  ;;  %v281_v1 = vld [vmem:[#allocation5 + $0x788] sm:$0xff]  ;;  %v334_v12 = vld [vmem:[#allocation5 + $0x930] sm:$0xff] }
  0xa1   :  { %682 = vmatprep.subr.mxu0 %v181_v3  ;;  %665 = vmatprep.subr.mxu1 %v234_v14  ;;  %v105_v3 = vld [vmem:[#allocation5 + $0x208] sm:$0xff]  ;;  %v324_v14 = vld [vmem:[#allocation5 + $0x8e0] sm:$0xff] }
  0xa2   :  { %683 = vmatpush1.msra.mxu0 %v180_v5  ;;  %666 = vmatpush2.msra.mxu1 %v233_v17  ;;  %v270_v5 = vld [vmem:[#allocation5 + $0x730] sm:$0xff]  ;;  %v323_v17 = vld [vmem:[#allocation5 + $0x8d8] sm:$0xff] }
  0xa3   :  { %684 = vmatprep.subr.mxu0 %v170_v7  ;;  %667 = vmatprep.subr.mxu1 %v223_v19  ;;  %v94_v7 = vld [vmem:[#allocation5 + $0x1b0] sm:$0xff]  ;;  %v313_v19 = vld [vmem:[#allocation5 + $0x888] sm:$0xff] }
  0xa4   :  { %685 = vmatpush1.msra.mxu0 %v169_v9  ;;  %668 = vmatpush2.msra.mxu1 %v222_v21  ;;  %v259_v9 = vld [vmem:[#allocation5 + $0x6d8] sm:$0xff]  ;;  %v312_v21 = vld [vmem:[#allocation5 + $0x880] sm:$0xff] }
  0xa5   :  { %686 = vmatprep.subr.mxu0 %v159_v11  ;;  %669 = vmatprep.mubr.f32.mxu1 %v977_v16  ;;  %v92_v16 = vld [vmem:[#allocation5 + $0x1a0] sm:$0xff]  ;;  %v83_v11 = vld [vmem:[#allocation5 + $0x158] sm:$0xff] }
  0xa6   :  { %687 = vmatpush1.msra.mxu0 %v158_v13  ;;  %844 = vmatprep.subr.mxu1 %v391_v24  ;;  %v248_v13 = vld [vmem:[#allocation5 + $0x680] sm:$0xff]  ;;  %v50_v24 = vld [vmem:[#allocation5 + $0x50] sm:$0xff] }
  0xa7   :  { %688 = vmatprep.subr.mxu0 %v148_v15  ;;  %670 = vmatmul.mubr.f32.vlgmr.msra.gmra.mxu1 %v980_v55  ;;  %v72_v15 = vld [vmem:[#allocation5 + $0x100] sm:$0xff] }
  0xa8   :  { %689 = vmatpush1.msra.mxu0 %v147_v18  ;;  %845 = vmatpush3.msra.mxu1 %v215_v27  ;;  %v237_v18 = vld [vmem:[#allocation5 + $0x628] sm:$0xff]  ;;  %v290_v27 = vld [vmem:[#allocation5 + $0x7d0] sm:$0xff] }
  0xa9   :  { %690 = vmatprep.subr.mxu0 %v137_v20  ;;  %846 = vmatprep.subr.mxu1 %v380_v29  ;;  %v61_v20 = vld [vmem:[#allocation5 + $0xa8] sm:$0xff]  ;;  %v884_v29 = vld [vmem:[#allocation2 + $0x8] sm:$0xff] }
  0xaa   :  { %691 = vmatpush1.msra.mxu0 %v136_v22  ;;  %847 = vmatpush3.msra.mxu1 %v204_v31  ;;  %v226_v22 = vld [vmem:[#allocation5 + $0x5d0] sm:$0xff]  ;;  %v269_v31 = vld [vmem:[#allocation5 + $0x728] sm:$0xff] }
  0xab   :  { %692 = vmatprep.subr.mxu0 %v126_v23  ;;  %848 = vmatprep.subr.mxu1 %v369_v33  ;;  %v302_v23 = vld [vmem:[#allocation5 + $0x830] sm:$0xff] }
  0xac   :  { %693 = vmatpush1.msra.mxu0 %v125_v25  ;;  %849 = vmatpush3.msra.mxu1 %v193_v35  ;;  %v301_v25 = vld [vmem:[#allocation5 + $0x828] sm:$0xff]  ;;  %v258_v33 = vld [vmem:[#allocation5 + $0x6d0] sm:$0xff]  ;;  %v247_v35 = vld [vmem:[#allocation5 + $0x678] sm:$0xff] }
  0xad   :  { %694 = vmatprep.subr.mxu0 %v115_v26  ;;  %850 = vmatprep.subr.mxu1 %v358_v36  ;;  %v291_v26 = vld [vmem:[#allocation5 + $0x7d8] sm:$0xff]  ;;  %v236_v36 = vld [vmem:[#allocation5 + $0x620] sm:$0xff] }
  0xae   :  { %695 = vmatpush1.msra.mxu0 %v114_v28  ;;  %851 = vmatpush3.msra.mxu1 %v182_v38  ;;  %v280_v28 = vld [vmem:[#allocation5 + $0x780] sm:$0xff]  ;;  %v225_v38 = vld [vmem:[#allocation5 + $0x5c8] sm:$0xff] }
  0xaf   :  { %696 = vmatprep.subr.mxu0 %v104_v30  ;;  %852 = vmatprep.subr.mxu1 %v347_v40  ;;  %v279_v30 = vld [vmem:[#allocation5 + $0x778] sm:$0xff] }
  0xb0   :  { %697 = vmatpush1.msra.mxu0 %v103_v32  ;;  %853 = vmatpush3.msra.mxu1 %v171_v42  ;;  %v268_v32 = vld [vmem:[#allocation5 + $0x720] sm:$0xff] }
  0xb1   :  { %698 = vmatprep.subr.mxu0 %v93_v34  ;;  %854 = vmatprep.subr.mxu1 %v336_v44  ;;  %v257_v34 = vld [vmem:[#allocation5 + $0x6c8] sm:$0xff] }
  0xb2   :  { %699 = vmatpush1.msra.mxu0 %v92_v16  ;;  %855 = vmatpush3.msra.mxu1 %v160_v46  ;;  %v246_v16 = vld [vmem:[#allocation5 + $0x670] sm:$0xff] }
  0xb3   :  { %700 = vmatprep.subr.mxu0 %v82_v37  ;;  %856 = vmatprep.subr.mxu1 %v325_v48  ;;  %v235_v37 = vld [vmem:[#allocation5 + $0x618] sm:$0xff] }
  0xb4   :  { %701 = vmatpush1.msra.mxu0 %v81_v39  ;;  %857 = vmatpush3.msra.mxu1 %v149_v50  ;;  %v224_v39 = vld [vmem:[#allocation5 + $0x5c0] sm:$0xff] }
  0xb5   :  { %702 = vmatprep.subr.mxu0 %v71_v41  ;;  %858 = vmatprep.subr.mxu1 %v314_v52 }
  0xb6   :  { %703 = vmatpush1.msra.mxu0 %v70_v43  ;;  %859 = vmatpush3.msra.mxu1 %v138_v54 }
  0xb7   :  { %704 = vmatprep.subr.mxu0 %v60_v45  ;;  %860 = vmatprep.subr.mxu1 %v303_v57 }
  0xb8   :  { %705 = vmatpush1.msra.mxu0 %v59_v47  ;;  %861 = vmatpush3.msra.mxu1 %v127_v59 }
  0xb9   :  { %706 = vmatprep.subr.mxu0 %v49_v49  ;;  %862 = vmatprep.subr.mxu1 %v292_v61 }
  0xba   :  { %707 = vmatpush1.msra.mxu0 %v48_v51  ;;  %863 = vmatpush3.msra.mxu1 %v116_v63 }
  0xbb   :  { %708 = vmatprep.subr.mxu0 %v390_v53  ;;  %864 = vmatprep.subr.mxu1 %v281_v1 }
  0xbc   :  { %709 = vmatpush2.msra.mxu0 %v389_v56  ;;  %865 = vmatpush3.msra.mxu1 %v105_v3 }
  0xbd   :  { %710 = vmatprep.subr.mxu0 %v379_v58  ;;  %866 = vmatprep.subr.mxu1 %v270_v5 }
  0xbe   :  { %711 = vmatpush2.msra.mxu0 %v378_v60  ;;  %867 = vmatpush3.msra.mxu1 %v94_v7 }
  0xbf   :  { %712 = vmatprep.subr.mxu0 %v368_v62  ;;  %868 = vmatprep.subr.mxu1 %v259_v9 }
  0xc0   :  { %713 = vmatpush2.msra.mxu0 %v367_v0  ;;  %869 = vmatpush3.msra.mxu1 %v83_v11 }
  0xc1   :  { %714 = vmatprep.subr.mxu0 %v357_v2  ;;  %870 = vmatprep.subr.mxu1 %v248_v13 }
  0xc2   :  { %715 = vmatpush2.msra.mxu0 %v356_v4  ;;  %871 = vmatpush3.msra.mxu1 %v72_v15 }
  0xc3   :  { %716 = vmatprep.subr.mxu0 %v346_v6  ;;  %872 = vmatprep.subr.mxu1 %v237_v18 }
  0xc4   :  { %717 = vmatpush2.msra.mxu0 %v345_v8  ;;  %873 = vmatpush3.msra.mxu1 %v61_v20 }
  0xc5   :  { %718 = vmatprep.subr.mxu0 %v335_v10  ;;  %874 = vmatprep.subr.mxu1 %v226_v22 }
  0xc6   :  { %719 = vmatpush2.msra.mxu0 %v334_v12  ;;  %875 = vmatpush3.msra.mxu1 %v50_v24 }
  0xc7   :  { %720 = vmatprep.subr.mxu0 %v324_v14  ;;  %811 = vmatprep.mubr.f32.mxu1 %v884_v29 }
  0xc8   :  { %721 = vmatpush2.msra.mxu0 %v323_v17  ;;  %812 = vmatmul.mubr.f32.vlgmr.msra.gmra.mxu1 %v980_v55 }
  0xc9   :  { %722 = vmatprep.subr.mxu0 %v313_v19  ;;  %740 = vmatprep.mubr.f32.mxu0 %v884_v29 }
  0xca   :  { %723 = vmatpush2.msra.mxu0 %v312_v21 }
  0xcb   :  { %724 = vmatprep.subr.mxu0 %v302_v23 }
  0xcc   :  { %725 = vmatpush2.msra.mxu0 %v301_v25 }
  0xcd   :  { %726 = vmatprep.subr.mxu0 %v291_v26 }
  0xce   :  { %727 = vmatpush2.msra.mxu0 %v290_v27 }
  0xcf   :  { %728 = vmatprep.subr.mxu0 %v280_v28 }
  0xd0   :  { %729 = vmatpush2.msra.mxu0 %v279_v30 }
  0xd1   :  { %730 = vmatprep.subr.mxu0 %v269_v31 }
  0xd2   :  { %731 = vmatpush2.msra.mxu0 %v268_v32 }
  0xd3   :  { %732 = vmatprep.subr.mxu0 %v258_v33 }
  0xd4   :  { %733 = vmatpush2.msra.mxu0 %v257_v34 }
  0xd5   :  { %734 = vmatprep.subr.mxu0 %v247_v35 }
  0xd6   :  { %735 = vmatpush2.msra.mxu0 %v246_v16 }
  0xd7   :  { %736 = vmatprep.subr.mxu0 %v236_v36 }
  0xd8   :  { %737 = vmatpush2.msra.mxu0 %v235_v37 }
  0xd9   :  { %738 = vmatprep.subr.mxu0 %v225_v38 }
  0xda   :  { %739 = vmatpush2.msra.mxu0 %v224_v39 }
  0xdb   :  { %741 = vmatmul.mubr.f32.vlgmr.msra.gmra.mxu0 %v980_v55 }
 0x11b   :  { %v458_v40 = vpop.f32.mrf.mxu0 }
 0x11c   :  { %817 = vst [vmem:[#allocation7] sm:$0xff] %v458_v40 }
 0x11d   :  { %v460_v41 = vpop.f32.mrf.mxu0 }
 0x11e   :  { %818 = vst [vmem:[#allocation7 + $0x8] sm:$0xff] %v460_v41 }
 0x123   :  { %v529_v42 = vpop.f32.mrf.mxu1 }
 0x124   :  { %819 = vst [vmem:[#allocation7 + $0x10] sm:$0xff] %v529_v42 }
 0x125   :  { %v531_v43 = vpop.f32.mrf.mxu1 }
 0x126   :  { %820 = vst [vmem:[#allocation7 + $0x18] sm:$0xff] %v531_v43 }
 0x15b   :  { %v600_v44 = vpop.f32.mrf.mxu0 }
 0x15c   :  { %821 = vst [vmem:[#allocation7 + $0x20] sm:$0xff] %v600_v44 }
 0x15d   :  { %v602_v45 = vpop.f32.mrf.mxu0 }
 0x15e   :  { %822 = vst [vmem:[#allocation7 + $0x28] sm:$0xff] %v602_v45 }
 0x167   :  { %v671_v46 = vpop.f32.mrf.mxu1 }
 0x168   :  { %823 = vst [vmem:[#allocation7 + $0x30] sm:$0xff] %v671_v46 }
 0x169   :  { %v673_v47 = vpop.f32.mrf.mxu1 }
 0x16a   :  { %824 = vst [vmem:[#allocation7 + $0x38] sm:$0xff] %v673_v47 }
 0x188   :  { %v876_v48 = vpop.f32.mrf.mxu1 }
 0x18a   :  { %v877_v49 = vpop.f32.mrf.mxu1 }
 0x18b   :  { %v878_v50 = vadd.f32 %v877_v49, %v876_v48 }
 0x18d   :  { %827 = vst [vmem:[#allocation7 + $0x50] sm:$0xff] %v878_v50 }
 0x19b   :  { %v742_v55 = vpop.f32.mrf.mxu0 }
 0x19c   :  { %825 = vst [vmem:[#allocation7 + $0x40] sm:$0xff] %v742_v55 }
 0x19d   :  { %v744_v51 = vpop.f32.mrf.mxu0 }
 0x19e   :  { %826 = vst [vmem:[#allocation7 + $0x48] sm:$0xff] %v744_v51 }
 0x19f   :  { %936 = shalt.err (!%p933_p0)
}
 0x1a0   :  { %837 = dma.vmem_to_hbm [thread:$0]  %s835_s1, 1408, %s996_s2, [#allocation4]  }
 0x1a1   :  { %949 = dma.done.wait [#allocation4], 1408  }
 0x1a2   :  { %950 = vsyncadd [#allocation4], 4294965888 }
 0x1a3   :  { %841 = vsyncpa [#allocation3], 1 }
 0x1a4   :  { %842 = vsyncpa [#allocation6], 1 }
 0x1a5   :  { %843 = vsyncpa [#allocation4], 1 }

// kernel: tpu_custom_call.1
= control target key start
LH: loop header
LB: loop body
LE: loop exit
PB: predicated region body
PF: predicated region fallthrough
CT: control target
= control target key end

     0   :  { %7 = vsyncpa [#allocation3], 0  ;;  %s994_s0 = inlined_call_operand.hbm [shape: f32[8,256], index: 0, kind: input, shape index: {}]   ;;  %s995_s1 = inlined_call_operand.hbm [shape: f32[256,1408], index: 1, kind: input, shape index: {}]   ;;  %s996_s2 = inlined_call_operand.hbm [shape: f32[8,1408], index: 2, kind: output, shape index: {}]  }
   0x1   :  { %8 = vsyncpa [#allocation6], 0 }
   0x2   :  { %9 = vsyncpa [#allocation4], 0  ;;  %s951_s9 = smov [#allocation2]   ;;  %s952_s11 = smov [#allocation5]  }
   0x3   :  { %s16_s10 = sshll.u32 %s951_s9, 4  ;;  %s25_s12 = sshll.u32 %s952_s11, 4  ;;  %s17_s10 = int_to_ptr.vmem [resolvable:$true] %s16_s10  ;;  %s26_s12 = int_to_ptr.vmem [resolvable:$true] %s25_s12 }
   0x4   :  { %s893_s13 = scalar_lea.vmem %s17_s10, 256  ;;  %p898_p1 = scmp.lt.s32.totalorder %s17_s10, %s17_s10 }
   0x5   :  { %p894_p0 = scmp.ne.s32.totalorder %s17_s10, %s893_s13  ;;  %p899_p2 = scmp.lt.s32.totalorder %s893_s13, %s893_s13 }
   0x7   :  { %p900_p3 = por %p899_p2, %p898_p1 }
   0x9   :  { %p901_p4 = pnand %p900_p3, %p894_p0 }
   0xb   :  { %904 = shalt.err (!%p901_p4)
}
   0xc   :  { %19 = dma.hbm_to_vmem [thread:$0]  %s994_s0, 256, %s17_s10, [#allocation3]  }
   0xd   :  { %s913_s16 = scalar_lea.vmem %s26_s12, 45056  ;;  %p918_p6 = scmp.lt.s32.totalorder %s26_s12, %s26_s12 }
   0xe   :  { %p914_p5 = scmp.ne.s32.totalorder %s26_s12, %s913_s16  ;;  %p919_p7 = scmp.lt.s32.totalorder %s913_s16, %s913_s16 }
  0x10   :  { %p920_p8 = por %p919_p7, %p918_p6 }
  0x12   :  { %p921_p9 = pnand %p920_p8, %p914_p5 }
  0x14   :  { %924 = shalt.err (!%p921_p9)
}
  0x15   :  { %s953_s17 = smov 1408   ;;  %s954_s18 = smov 88  }
  0x16   :  { %31 = dma.hbm_to_vmem [thread:$0]  %s995_s1, 45056, %s26_s12, [#allocation6], %s953_s17, %s953_s17, %s954_s18  }
  0x17   :  { %945 = dma.done.wait [#allocation3], 256  }
  0x18   :  { %946 = vsyncadd [#allocation3], 4294967040 }
  0x19   :  { %947 = dma.done.wait [#allocation6], 45056  }
  0x1a   :  { %948 = vsyncadd [#allocation6], 4294922240  ;;  %v206_v0 = vld [vmem:[#allocation5 + $0x530] sm:$0xff]  ;;  %v205_v1 = vld [vmem:[#allocation5 + $0x528] sm:$0xff]  ;;  %s955_s0 = smov [#allocation7]  }
  0x1b   :  { %v195_v2 = vld [vmem:[#allocation5 + $0x4d8] sm:$0xff]  ;;  %392 = vmatprep.subr.mxu0 %v206_v0  ;;  %v194_v3 = vld [vmem:[#allocation5 + $0x4d0] sm:$0xff]  ;;  %v184_v4 = vld [vmem:[#allocation5 + $0x480] sm:$0xff]  ;;  %s834_s1 = sshll.u32 %s955_s0, 4  ;;  %s835_s1 = int_to_ptr.vmem [resolvable:$true] %s834_s1 }
  0x1c   :  { %393 = vmatpush1.msra.mxu0 %v205_v1  ;;  %v183_v5 = vld [vmem:[#allocation5 + $0x478] sm:$0xff]  ;;  %v173_v6 = vld [vmem:[#allocation5 + $0x428] sm:$0xff]  ;;  %v172_v7 = vld [vmem:[#allocation5 + $0x420] sm:$0xff]  ;;  %s925_s21 = scalar_lea.vmem %s835_s1, 1408  ;;  %p930_p11 = scmp.lt.s32.totalorder %s835_s1, %s835_s1 }
  0x1d   :  { %394 = vmatprep.subr.mxu0 %v195_v2  ;;  %v162_v8 = vld [vmem:[#allocation5 + $0x3d0] sm:$0xff]  ;;  %v161_v9 = vld [vmem:[#allocation5 + $0x3c8] sm:$0xff]  ;;  %v151_v10 = vld [vmem:[#allocation5 + $0x378] sm:$0xff]  ;;  %p926_p10 = scmp.ne.s32.totalorder %s835_s1, %s925_s21  ;;  %p931_p12 = scmp.lt.s32.totalorder %s925_s21, %s925_s21 }
  0x1e   :  { %395 = vmatpush1.msra.mxu0 %v194_v3  ;;  %v150_v11 = vld [vmem:[#allocation5 + $0x370] sm:$0xff]  ;;  %v208_v12 = vld [vmem:[#allocation5 + $0x540] sm:$0xff]  ;;  %v207_v14 = vld [vmem:[#allocation5 + $0x538] sm:$0xff] }
  0x1f   :  { %396 = vmatprep.subr.mxu0 %v184_v4  ;;  %v140_v13 = vld [vmem:[#allocation5 + $0x320] sm:$0xff]  ;;  %463 = vmatprep.subr.mxu1 %v208_v12  ;;  %v139_v15 = vld [vmem:[#allocation5 + $0x318] sm:$0xff]  ;;  %v197_v16 = vld [vmem:[#allocation5 + $0x4e8] sm:$0xff]  ;;  %p932_p13 = por %p931_p12, %p930_p11 }
  0x20   :  { %397 = vmatpush1.msra.mxu0 %v183_v5  ;;  %464 = vmatpush1.msra.mxu1 %v207_v14  ;;  %v196_v17 = vld [vmem:[#allocation5 + $0x4e0] sm:$0xff]  ;;  %v129_v18 = vld [vmem:[#allocation5 + $0x2c8] sm:$0xff]  ;;  %v186_v19 = vld [vmem:[#allocation5 + $0x490] sm:$0xff] }
  0x21   :  { %398 = vmatprep.subr.mxu0 %v173_v6  ;;  %465 = vmatprep.subr.mxu1 %v197_v16  ;;  %v128_v20 = vld [vmem:[#allocation5 + $0x2c0] sm:$0xff]  ;;  %v185_v21 = vld [vmem:[#allocation5 + $0x488] sm:$0xff]  ;;  %v175_v22 = vld [vmem:[#allocation5 + $0x438] sm:$0xff]  ;;  %p933_p0 = pnand %p932_p13, %p926_p10 }
  0x22   :  { %399 = vmatpush1.msra.mxu0 %v172_v7  ;;  %466 = vmatpush1.msra.mxu1 %v196_v17  ;;  %v118_v23 = vld [vmem:[#allocation5 + $0x270] sm:$0xff]  ;;  %v117_v25 = vld [vmem:[#allocation5 + $0x268] sm:$0xff]  ;;  %v164_v26 = vld [vmem:[#allocation5 + $0x3e0] sm:$0xff] }
  0x23   :  { %400 = vmatprep.subr.mxu0 %v162_v8  ;;  %467 = vmatprep.subr.mxu1 %v186_v19  ;;  %v174_v24 = vld [vmem:[#allocation5 + $0x430] sm:$0xff]  ;;  %v107_v27 = vld [vmem:[#allocation5 + $0x218] sm:$0xff]  ;;  %v153_v30 = vld [vmem:[#allocation5 + $0x388] sm:$0xff] }
  0x24   :  { %401 = vmatpush1.msra.mxu0 %v161_v9  ;;  %468 = vmatpush1.msra.mxu1 %v185_v21  ;;  %v163_v28 = vld [vmem:[#allocation5 + $0x3d8] sm:$0xff]  ;;  %v106_v29 = vld [vmem:[#allocation5 + $0x210] sm:$0xff]  ;;  %v96_v31 = vld [vmem:[#allocation5 + $0x1c0] sm:$0xff] }
  0x25   :  { %402 = vmatprep.subr.mxu0 %v151_v10  ;;  %469 = vmatprep.subr.mxu1 %v175_v22  ;;  %v152_v32 = vld [vmem:[#allocation5 + $0x380] sm:$0xff]  ;;  %v95_v33 = vld [vmem:[#allocation5 + $0x1b8] sm:$0xff]  ;;  %v142_v34 = vld [vmem:[#allocation5 + $0x330] sm:$0xff] }
  0x26   :  { %403 = vmatpush1.msra.mxu0 %v150_v11  ;;  %470 = vmatpush1.msra.mxu1 %v174_v24  ;;  %v85_v35 = vld [vmem:[#allocation5 + $0x168] sm:$0xff]  ;;  %v84_v37 = vld [vmem:[#allocation5 + $0x160] sm:$0xff]  ;;  %v131_v38 = vld [vmem:[#allocation5 + $0x2d8] sm:$0xff] }
  0x27   :  { %404 = vmatprep.subr.mxu0 %v140_v13  ;;  %471 = vmatprep.subr.mxu1 %v164_v26  ;;  %v141_v36 = vld [vmem:[#allocation5 + $0x328] sm:$0xff]  ;;  %v74_v39 = vld [vmem:[#allocation5 + $0x110] sm:$0xff]  ;;  %v120_v42 = vld [vmem:[#allocation5 + $0x280] sm:$0xff] }
  0x28   :  { %405 = vmatpush1.msra.mxu0 %v139_v15  ;;  %472 = vmatpush1.msra.mxu1 %v163_v28  ;;  %v130_v40 = vld [vmem:[#allocation5 + $0x2d0] sm:$0xff]  ;;  %v73_v41 = vld [vmem:[#allocation5 + $0x108] sm:$0xff]  ;;  %v63_v43 = vld [vmem:[#allocation5 + $0xb8] sm:$0xff] }
  0x29   :  { %406 = vmatprep.subr.mxu0 %v129_v18  ;;  %473 = vmatprep.subr.mxu1 %v153_v30  ;;  %v119_v44 = vld [vmem:[#allocation5 + $0x278] sm:$0xff]  ;;  %v62_v45 = vld [vmem:[#allocation5 + $0xb0] sm:$0xff]  ;;  %v109_v46 = vld [vmem:[#allocation5 + $0x228] sm:$0xff] }
  0x2a   :  { %407 = vmatpush1.msra.mxu0 %v128_v20  ;;  %474 = vmatpush1.msra.mxu1 %v152_v32  ;;  %v52_v47 = vld [vmem:[#allocation5 + $0x60] sm:$0xff]  ;;  %v51_v49 = vld [vmem:[#allocation5 + $0x58] sm:$0xff]  ;;  %v98_v50 = vld [vmem:[#allocation5 + $0x1d0] sm:$0xff] }
  0x2b   :  { %408 = vmatprep.subr.mxu0 %v118_v23  ;;  %475 = vmatprep.subr.mxu1 %v142_v34  ;;  %v108_v48 = vld [vmem:[#allocation5 + $0x220] sm:$0xff]  ;;  %v41_v51 = vld [vmem:[#allocation5 + $0x8] sm:$0xff]  ;;  %v87_v54 = vld [vmem:[#allocation5 + $0x178] sm:$0xff] }
  0x2c   :  { %409 = vmatpush1.msra.mxu0 %v117_v25  ;;  %476 = vmatpush1.msra.mxu1 %v141_v36  ;;  %v97_v52 = vld [vmem:[#allocation5 + $0x1c8] sm:$0xff]  ;;  %v40_v53 = vld [vmem:[#allocation5] sm:$0xff]  ;;  %v382_v55 = vld [vmem:[#allocation5 + $0xab0] sm:$0xff] }
  0x2d   :  { %410 = vmatprep.subr.mxu0 %v107_v27  ;;  %477 = vmatprep.subr.mxu1 %v131_v38  ;;  %v86_v56 = vld [vmem:[#allocation5 + $0x170] sm:$0xff]  ;;  %v381_v57 = vld [vmem:[#allocation5 + $0xaa8] sm:$0xff]  ;;  %v76_v58 = vld [vmem:[#allocation5 + $0x120] sm:$0xff] }
  0x2e   :  { %411 = vmatpush1.msra.mxu0 %v106_v29  ;;  %478 = vmatpush1.msra.mxu1 %v130_v40  ;;  %v371_v59 = vld [vmem:[#allocation5 + $0xa58] sm:$0xff]  ;;  %v370_v61 = vld [vmem:[#allocation5 + $0xa50] sm:$0xff]  ;;  %v65_v62 = vld [vmem:[#allocation5 + $0xc8] sm:$0xff] }
  0x2f   :  { %412 = vmatprep.subr.mxu0 %v96_v31  ;;  %479 = vmatprep.subr.mxu1 %v120_v42  ;;  %v75_v60 = vld [vmem:[#allocation5 + $0x118] sm:$0xff]  ;;  %v360_v63 = vld [vmem:[#allocation5 + $0xa00] sm:$0xff]  ;;  %v54_v2 = vld [vmem:[#allocation5 + $0x70] sm:$0xff] }
  0x30   :  { %413 = vmatpush1.msra.mxu0 %v95_v33  ;;  %480 = vmatpush1.msra.mxu1 %v119_v44  ;;  %v64_v0 = vld [vmem:[#allocation5 + $0xc0] sm:$0xff]  ;;  %v359_v1 = vld [vmem:[#allocation5 + $0x9f8] sm:$0xff]  ;;  %v349_v3 = vld [vmem:[#allocation5 + $0x9a8] sm:$0xff] }
  0x31   :  { %414 = vmatprep.subr.mxu0 %v85_v35  ;;  %481 = vmatprep.subr.mxu1 %v109_v46  ;;  %v53_v4 = vld [vmem:[#allocation5 + $0x68] sm:$0xff]  ;;  %v348_v5 = vld [vmem:[#allocation5 + $0x9a0] sm:$0xff]  ;;  %v43_v6 = vld [vmem:[#allocation5 + $0x18] sm:$0xff] }
  0x32   :  { %415 = vmatpush1.msra.mxu0 %v84_v37  ;;  %482 = vmatpush1.msra.mxu1 %v108_v48  ;;  %v338_v7 = vld [vmem:[#allocation5 + $0x950] sm:$0xff]  ;;  %v337_v9 = vld [vmem:[#allocation5 + $0x948] sm:$0xff]  ;;  %v384_v10 = vld [vmem:[#allocation5 + $0xac0] sm:$0xff] }
  0x33   :  { %416 = vmatprep.subr.mxu0 %v74_v39  ;;  %483 = vmatprep.subr.mxu1 %v98_v50  ;;  %v42_v8 = vld [vmem:[#allocation5 + $0x10] sm:$0xff]  ;;  %v327_v11 = vld [vmem:[#allocation5 + $0x8f8] sm:$0xff]  ;;  %v373_v14 = vld [vmem:[#allocation5 + $0xa68] sm:$0xff] }
  0x34   :  { %417 = vmatpush1.msra.mxu0 %v73_v41  ;;  %484 = vmatpush1.msra.mxu1 %v97_v52  ;;  %v383_v12 = vld [vmem:[#allocation5 + $0xab8] sm:$0xff]  ;;  %v326_v13 = vld [vmem:[#allocation5 + $0x8f0] sm:$0xff]  ;;  %v316_v15 = vld [vmem:[#allocation5 + $0x8a0] sm:$0xff] }
  0x35   :  { %418 = vmatprep.subr.mxu0 %v63_v43  ;;  %485 = vmatprep.subr.mxu1 %v87_v54  ;;  %v977_v16 = vld [vmem:[#allocation2 + $0x8] sm:$0xff]  ;;  %v372_v18 = vld [vmem:[#allocation5 + $0xa60] sm:$0xff]  ;;  %v305_v19 = vld [vmem:[#allocation5 + $0x848] sm:$0xff] }
  0x36   :  { %419 = vmatpush1.msra.mxu0 %v62_v45  ;;  %486 = vmatpush1.msra.mxu1 %v86_v56  ;;  %v315_v17 = vld [vmem:[#allocation5 + $0x898] sm:$0xff]  ;;  %v362_v20 = vld [vmem:[#allocation5 + $0xa10] sm:$0xff]  ;;  %v304_v21 = vld [vmem:[#allocation5 + $0x840] sm:$0xff] }
  0x37   :  { %420 = vmatprep.subr.mxu0 %v52_v47  ;;  %487 = vmatprep.subr.mxu1 %v76_v58  ;;  %v361_v22 = vld [vmem:[#allocation5 + $0xa08] sm:$0xff]  ;;  %v294_v23 = vld [vmem:[#allocation5 + $0x7f0] sm:$0xff]  ;;  %v351_v24 = vld [vmem:[#allocation5 + $0x9b8] sm:$0xff] }
  0x38   :  { %421 = vmatpush1.msra.mxu0 %v51_v49  ;;  %488 = vmatpush1.msra.mxu1 %v75_v60  ;;  %v293_v25 = vld [vmem:[#allocation5 + $0x7e8] sm:$0xff]  ;;  %v350_v26 = vld [vmem:[#allocation5 + $0x9b0] sm:$0xff]  ;;  %v283_v27 = vld [vmem:[#allocation5 + $0x798] sm:$0xff] }
  0x39   :  { %422 = vmatprep.subr.mxu0 %v41_v51  ;;  %489 = vmatprep.subr.mxu1 %v65_v62  ;;  %v340_v28 = vld [vmem:[#allocation5 + $0x960] sm:$0xff]  ;;  %v282_v29 = vld [vmem:[#allocation5 + $0x790] sm:$0xff]  ;;  %v339_v30 = vld [vmem:[#allocation5 + $0x958] sm:$0xff] }
  0x3a   :  { %423 = vmatpush1.msra.mxu0 %v40_v53  ;;  %490 = vmatpush1.msra.mxu1 %v64_v0  ;;  %v272_v31 = vld [vmem:[#allocation5 + $0x740] sm:$0xff]  ;;  %v329_v32 = vld [vmem:[#allocation5 + $0x908] sm:$0xff]  ;;  %v271_v33 = vld [vmem:[#allocation5 + $0x738] sm:$0xff] }
  0x3b   :  { %424 = vmatprep.subr.mxu0 %v382_v55  ;;  %491 = vmatprep.subr.mxu1 %v54_v2  ;;  %v328_v34 = vld [vmem:[#allocation5 + $0x900] sm:$0xff]  ;;  %v261_v35 = vld [vmem:[#allocation5 + $0x6e8] sm:$0xff]  ;;  %v318_v36 = vld [vmem:[#allocation5 + $0x8b0] sm:$0xff] }
  0x3c   :  { %425 = vmatpush2.msra.mxu0 %v381_v57  ;;  %492 = vmatpush1.msra.mxu1 %v53_v4  ;;  %v260_v37 = vld [vmem:[#allocation5 + $0x6e0] sm:$0xff]  ;;  %v317_v38 = vld [vmem:[#allocation5 + $0x8a8] sm:$0xff]  ;;  %v250_v39 = vld [vmem:[#allocation5 + $0x690] sm:$0xff] }
  0x3d   :  { %426 = vmatprep.subr.mxu0 %v371_v59  ;;  %493 = vmatprep.subr.mxu1 %v43_v6  ;;  %v307_v40 = vld [vmem:[#allocation5 + $0x858] sm:$0xff]  ;;  %v249_v41 = vld [vmem:[#allocation5 + $0x688] sm:$0xff]  ;;  %v306_v42 = vld [vmem:[#allocation5 + $0x850] sm:$0xff] }
  0x3e   :  { %427 = vmatpush2.msra.mxu0 %v370_v61  ;;  %494 = vmatpush1.msra.mxu1 %v42_v8  ;;  %v239_v43 = vld [vmem:[#allocation5 + $0x638] sm:$0xff]  ;;  %v296_v44 = vld [vmem:[#allocation5 + $0x800] sm:$0xff]  ;;  %v238_v45 = vld [vmem:[#allocation5 + $0x630] sm:$0xff] }
  0x3f   :  { %428 = vmatprep.subr.mxu0 %v360_v63  ;;  %495 = vmatprep.subr.mxu1 %v384_v10  ;;  %v295_v46 = vld [vmem:[#allocation5 + $0x7f8] sm:$0xff]  ;;  %v228_v47 = vld [vmem:[#allocation5 + $0x5e0] sm:$0xff]  ;;  %v285_v48 = vld [vmem:[#allocation5 + $0x7a8] sm:$0xff] }
  0x40   :  { %429 = vmatpush2.msra.mxu0 %v359_v1  ;;  %496 = vmatpush2.msra.mxu1 %v383_v12  ;;  %v227_v49 = vld [vmem:[#allocation5 + $0x5d8] sm:$0xff]  ;;  %v284_v50 = vld [vmem:[#allocation5 + $0x7a0] sm:$0xff]  ;;  %v217_v51 = vld [vmem:[#allocation5 + $0x588] sm:$0xff] }
  0x41   :  { %430 = vmatprep.subr.mxu0 %v349_v3  ;;  %497 = vmatprep.subr.mxu1 %v373_v14  ;;  %v274_v52 = vld [vmem:[#allocation5 + $0x750] sm:$0xff]  ;;  %v216_v53 = vld [vmem:[#allocation5 + $0x580] sm:$0xff]  ;;  %v273_v54 = vld [vmem:[#allocation5 + $0x748] sm:$0xff] }
  0x42   :  { %431 = vmatpush2.msra.mxu0 %v348_v5  ;;  %456 = vmatprep.mubr.f32.mxu0 %v977_v16  ;;  %v980_v55 = vld [vmem:[#allocation2] sm:$0xff]  ;;  %v209_v57 = vld [vmem:[#allocation5 + $0x548] sm:$0xff]  ;;  %v263_v58 = vld [vmem:[#allocation5 + $0x6f8] sm:$0xff] }
  0x43   :  { %432 = vmatprep.subr.mxu0 %v338_v7  ;;  %498 = vmatpush2.msra.mxu1 %v372_v18  ;;  %v210_v56 = vld [vmem:[#allocation5 + $0x550] sm:$0xff]  ;;  %v199_v59 = vld [vmem:[#allocation5 + $0x4f8] sm:$0xff]  ;;  %v252_v62 = vld [vmem:[#allocation5 + $0x6a0] sm:$0xff] }
  0x44   :  { %433 = vmatpush2.msra.mxu0 %v337_v9  ;;  %499 = vmatprep.subr.mxu1 %v362_v20  ;;  %v262_v60 = vld [vmem:[#allocation5 + $0x6f0] sm:$0xff]  ;;  %v188_v63 = vld [vmem:[#allocation5 + $0x4a0] sm:$0xff]  ;;  %v251_v0 = vld [vmem:[#allocation5 + $0x698] sm:$0xff] }
  0x45   :  { %434 = vmatprep.subr.mxu0 %v327_v11  ;;  %500 = vmatpush2.msra.mxu1 %v361_v22  ;;  %v198_v61 = vld [vmem:[#allocation5 + $0x4f0] sm:$0xff]  ;;  %v187_v1 = vld [vmem:[#allocation5 + $0x498] sm:$0xff]  ;;  %v241_v2 = vld [vmem:[#allocation5 + $0x648] sm:$0xff] }
  0x46   :  { %435 = vmatpush2.msra.mxu0 %v326_v13  ;;  %501 = vmatprep.subr.mxu1 %v351_v24  ;;  %v177_v3 = vld [vmem:[#allocation5 + $0x448] sm:$0xff]  ;;  %v240_v4 = vld [vmem:[#allocation5 + $0x640] sm:$0xff]  ;;  %v230_v6 = vld [vmem:[#allocation5 + $0x5f0] sm:$0xff] }
  0x47   :  { %436 = vmatprep.subr.mxu0 %v316_v15  ;;  %502 = vmatpush2.msra.mxu1 %v350_v26  ;;  %v176_v5 = vld [vmem:[#allocation5 + $0x440] sm:$0xff]  ;;  %v166_v7 = vld [vmem:[#allocation5 + $0x3f0] sm:$0xff]  ;;  %v229_v8 = vld [vmem:[#allocation5 + $0x5e8] sm:$0xff] }
  0x48   :  { %437 = vmatpush2.msra.mxu0 %v315_v17  ;;  %503 = vmatprep.subr.mxu1 %v340_v28  ;;  %v165_v9 = vld [vmem:[#allocation5 + $0x3e8] sm:$0xff]  ;;  %v219_v10 = vld [vmem:[#allocation5 + $0x598] sm:$0xff]  ;;  %v218_v12 = vld [vmem:[#allocation5 + $0x590] sm:$0xff] }
  0x49   :  { %438 = vmatprep.subr.mxu0 %v305_v19  ;;  %504 = vmatpush2.msra.mxu1 %v339_v30  ;;  %v155_v11 = vld [vmem:[#allocation5 + $0x398] sm:$0xff]  ;;  %v154_v13 = vld [vmem:[#allocation5 + $0x390] sm:$0xff]  ;;  %v144_v14 = vld [vmem:[#allocation5 + $0x340] sm:$0xff] }
  0x4a   :  { %439 = vmatpush2.msra.mxu0 %v304_v21  ;;  %505 = vmatprep.subr.mxu1 %v329_v32  ;;  %v212_v15 = vld [vmem:[#allocation5 + $0x560] sm:$0xff]  ;;  %v143_v17 = vld [vmem:[#allocation5 + $0x338] sm:$0xff]  ;;  %v133_v18 = vld [vmem:[#allocation5 + $0x2e8] sm:$0xff] }
  0x4b   :  { %440 = vmatprep.subr.mxu0 %v294_v23  ;;  %506 = vmatpush2.msra.mxu1 %v328_v34  ;;  %v211_v19 = vld [vmem:[#allocation5 + $0x558] sm:$0xff]  ;;  %v132_v20 = vld [vmem:[#allocation5 + $0x2e0] sm:$0xff]  ;;  %v201_v21 = vld [vmem:[#allocation5 + $0x508] sm:$0xff] }
  0x4c   :  { %441 = vmatpush2.msra.mxu0 %v293_v25  ;;  %507 = vmatprep.subr.mxu1 %v318_v36  ;;  %v122_v22 = vld [vmem:[#allocation5 + $0x290] sm:$0xff]  ;;  %v200_v23 = vld [vmem:[#allocation5 + $0x500] sm:$0xff]  ;;  %v121_v24 = vld [vmem:[#allocation5 + $0x288] sm:$0xff] }
  0x4d   :  { %442 = vmatprep.subr.mxu0 %v283_v27  ;;  %508 = vmatpush2.msra.mxu1 %v317_v38  ;;  %v190_v25 = vld [vmem:[#allocation5 + $0x4b0] sm:$0xff]  ;;  %v111_v26 = vld [vmem:[#allocation5 + $0x238] sm:$0xff]  ;;  %v189_v27 = vld [vmem:[#allocation5 + $0x4a8] sm:$0xff] }
  0x4e   :  { %443 = vmatpush2.msra.mxu0 %v282_v29  ;;  %509 = vmatprep.subr.mxu1 %v307_v40  ;;  %v110_v28 = vld [vmem:[#allocation5 + $0x230] sm:$0xff]  ;;  %v179_v29 = vld [vmem:[#allocation5 + $0x458] sm:$0xff]  ;;  %v100_v30 = vld [vmem:[#allocation5 + $0x1e0] sm:$0xff] }
  0x4f   :  { %444 = vmatprep.subr.mxu0 %v272_v31  ;;  %510 = vmatpush2.msra.mxu1 %v306_v42  ;;  %v178_v31 = vld [vmem:[#allocation5 + $0x450] sm:$0xff]  ;;  %v99_v32 = vld [vmem:[#allocation5 + $0x1d8] sm:$0xff]  ;;  %v89_v34 = vld [vmem:[#allocation5 + $0x188] sm:$0xff] }
  0x50   :  { %445 = vmatpush2.msra.mxu0 %v271_v33  ;;  %511 = vmatprep.subr.mxu1 %v296_v44  ;;  %v168_v33 = vld [vmem:[#allocation5 + $0x400] sm:$0xff]  ;;  %v78_v38 = vld [vmem:[#allocation5 + $0x130] sm:$0xff]  ;;  %v77_v40 = vld [vmem:[#allocation5 + $0x128] sm:$0xff] }
  0x51   :  { %446 = vmatprep.subr.mxu0 %v261_v35  ;;  %512 = vmatpush2.msra.mxu1 %v295_v46  ;;  %v167_v35 = vld [vmem:[#allocation5 + $0x3f8] sm:$0xff]  ;;  %v88_v36 = vld [vmem:[#allocation5 + $0x180] sm:$0xff]  ;;  %v66_v44 = vld [vmem:[#allocation5 + $0xd0] sm:$0xff] }
  0x52   :  { %447 = vmatpush2.msra.mxu0 %v260_v37  ;;  %513 = vmatprep.subr.mxu1 %v285_v48  ;;  %v157_v37 = vld [vmem:[#allocation5 + $0x3a8] sm:$0xff]  ;;  %v67_v42 = vld [vmem:[#allocation5 + $0xd8] sm:$0xff]  ;;  %v56_v46 = vld [vmem:[#allocation5 + $0x80] sm:$0xff] }
  0x53   :  { %448 = vmatprep.subr.mxu0 %v250_v39  ;;  %514 = vmatpush2.msra.mxu1 %v284_v50  ;;  %v156_v39 = vld [vmem:[#allocation5 + $0x3a0] sm:$0xff]  ;;  %v55_v48 = vld [vmem:[#allocation5 + $0x78] sm:$0xff]  ;;  %v45_v50 = vld [vmem:[#allocation5 + $0x28] sm:$0xff] }
  0x54   :  { %449 = vmatpush2.msra.mxu0 %v249_v41  ;;  %515 = vmatprep.subr.mxu1 %v274_v52  ;;  %v146_v41 = vld [vmem:[#allocation5 + $0x350] sm:$0xff]  ;;  %v44_v52 = vld [vmem:[#allocation5 + $0x20] sm:$0xff] }
  0x55   :  { %450 = vmatprep.subr.mxu0 %v239_v43  ;;  %516 = vmatpush2.msra.mxu1 %v273_v54  ;;  %v145_v43 = vld [vmem:[#allocation5 + $0x348] sm:$0xff]  ;;  %v386_v54 = vld [vmem:[#allocation5 + $0xad0] sm:$0xff] }
  0x56   :  { %451 = vmatpush2.msra.mxu0 %v238_v45  ;;  %517 = vmatprep.subr.mxu1 %v263_v58  ;;  %v135_v45 = vld [vmem:[#allocation5 + $0x2f8] sm:$0xff]  ;;  %v102_v58 = vld [vmem:[#allocation5 + $0x1f0] sm:$0xff] }
  0x57   :  { %452 = vmatprep.subr.mxu0 %v228_v47  ;;  %518 = vmatpush2.msra.mxu1 %v262_v60  ;;  %v134_v47 = vld [vmem:[#allocation5 + $0x2f0] sm:$0xff]  ;;  %v101_v60 = vld [vmem:[#allocation5 + $0x1e8] sm:$0xff] }
  0x58   :  { %453 = vmatpush2.msra.mxu0 %v227_v49  ;;  %519 = vmatprep.subr.mxu1 %v252_v62  ;;  %v124_v49 = vld [vmem:[#allocation5 + $0x2a0] sm:$0xff]  ;;  %v91_v62 = vld [vmem:[#allocation5 + $0x198] sm:$0xff] }
  0x59   :  { %454 = vmatprep.subr.mxu0 %v217_v51  ;;  %520 = vmatpush2.msra.mxu1 %v251_v0  ;;  %v123_v51 = vld [vmem:[#allocation5 + $0x298] sm:$0xff]  ;;  %v90_v0 = vld [vmem:[#allocation5 + $0x190] sm:$0xff] }
  0x5a   :  { %455 = vmatpush2.msra.mxu0 %v216_v53  ;;  %521 = vmatprep.subr.mxu1 %v241_v2  ;;  %v113_v53 = vld [vmem:[#allocation5 + $0x248] sm:$0xff]  ;;  %v80_v2 = vld [vmem:[#allocation5 + $0x140] sm:$0xff] }
  0x5b   :  { %457 = vmatmul.mubr.f32.vlgmr.msra.gmra.mxu0 %v980_v55  ;;  %534 = vmatprep.subr.mxu0 %v210_v56  ;;  %v112_v56 = vld [vmem:[#allocation5 + $0x240] sm:$0xff] }
  0x5c   :  { %535 = vmatpush1.msra.mxu0 %v209_v57  ;;  %522 = vmatpush2.msra.mxu1 %v240_v4  ;;  %v385_v57 = vld [vmem:[#allocation5 + $0xac8] sm:$0xff]  ;;  %v79_v4 = vld [vmem:[#allocation5 + $0x138] sm:$0xff] }
  0x5d   :  { %536 = vmatprep.subr.mxu0 %v199_v59  ;;  %523 = vmatprep.subr.mxu1 %v230_v6  ;;  %v375_v59 = vld [vmem:[#allocation5 + $0xa78] sm:$0xff]  ;;  %v69_v6 = vld [vmem:[#allocation5 + $0xe8] sm:$0xff] }
  0x5e   :  { %537 = vmatpush1.msra.mxu0 %v198_v61  ;;  %524 = vmatpush2.msra.mxu1 %v229_v8  ;;  %v374_v61 = vld [vmem:[#allocation5 + $0xa70] sm:$0xff]  ;;  %v68_v8 = vld [vmem:[#allocation5 + $0xe0] sm:$0xff] }
  0x5f   :  { %538 = vmatprep.subr.mxu0 %v188_v63  ;;  %525 = vmatprep.subr.mxu1 %v219_v10  ;;  %v364_v63 = vld [vmem:[#allocation5 + $0xa20] sm:$0xff]  ;;  %v58_v10 = vld [vmem:[#allocation5 + $0x90] sm:$0xff] }
  0x60   :  { %539 = vmatpush1.msra.mxu0 %v187_v1  ;;  %526 = vmatpush2.msra.mxu1 %v218_v12  ;;  %v363_v1 = vld [vmem:[#allocation5 + $0xa18] sm:$0xff]  ;;  %v57_v12 = vld [vmem:[#allocation5 + $0x88] sm:$0xff] }
  0x61   :  { %540 = vmatprep.subr.mxu0 %v177_v3  ;;  %527 = vmatprep.mubr.f32.mxu1 %v977_v16  ;;  %v353_v3 = vld [vmem:[#allocation5 + $0x9c8] sm:$0xff] }
  0x62   :  { %541 = vmatpush1.msra.mxu0 %v176_v5  ;;  %605 = vmatprep.subr.mxu1 %v212_v15  ;;  %v352_v5 = vld [vmem:[#allocation5 + $0x9c0] sm:$0xff] }
  0x63   :  { %542 = vmatprep.subr.mxu0 %v166_v7  ;;  %528 = vmatmul.mubr.f32.vlgmr.msra.gmra.mxu1 %v980_v55  ;;  %v342_v7 = vld [vmem:[#allocation5 + $0x970] sm:$0xff]  ;;  %v320_v15 = vld [vmem:[#allocation5 + $0x8c0] sm:$0xff] }
  0x64   :  { %543 = vmatpush1.msra.mxu0 %v165_v9  ;;  %606 = vmatpush1.msra.mxu1 %v211_v19  ;;  %v341_v9 = vld [vmem:[#allocation5 + $0x968] sm:$0xff]  ;;  %v388_v19 = vld [vmem:[#allocation5 + $0xae0] sm:$0xff] }
  0x65   :  { %544 = vmatprep.subr.mxu0 %v155_v11  ;;  %607 = vmatprep.subr.mxu1 %v201_v21  ;;  %v331_v11 = vld [vmem:[#allocation5 + $0x918] sm:$0xff] }
  0x66   :  { %545 = vmatpush1.msra.mxu0 %v154_v13  ;;  %608 = vmatpush1.msra.mxu1 %v200_v23  ;;  %v330_v13 = vld [vmem:[#allocation5 + $0x910] sm:$0xff]  ;;  %v387_v21 = vld [vmem:[#allocation5 + $0xad8] sm:$0xff]  ;;  %v377_v23 = vld [vmem:[#allocation5 + $0xa88] sm:$0xff] }
  0x67   :  { %546 = vmatprep.subr.mxu0 %v144_v14  ;;  %609 = vmatprep.subr.mxu1 %v190_v25  ;;  %v47_v14 = vld [vmem:[#allocation5 + $0x38] sm:$0xff]  ;;  %v297_v25 = vld [vmem:[#allocation5 + $0x808] sm:$0xff] }
  0x68   :  { %547 = vmatpush1.msra.mxu0 %v143_v17  ;;  %610 = vmatpush1.msra.mxu1 %v189_v27  ;;  %v46_v17 = vld [vmem:[#allocation5 + $0x30] sm:$0xff]  ;;  %v287_v27 = vld [vmem:[#allocation5 + $0x7b8] sm:$0xff] }
  0x69   :  { %548 = vmatprep.subr.mxu0 %v133_v18  ;;  %611 = vmatprep.subr.mxu1 %v179_v29  ;;  %v319_v18 = vld [vmem:[#allocation5 + $0x8b8] sm:$0xff]  ;;  %v286_v29 = vld [vmem:[#allocation5 + $0x7b0] sm:$0xff] }
  0x6a   :  { %549 = vmatpush1.msra.mxu0 %v132_v20  ;;  %612 = vmatpush1.msra.mxu1 %v178_v31  ;;  %v309_v20 = vld [vmem:[#allocation5 + $0x868] sm:$0xff]  ;;  %v276_v31 = vld [vmem:[#allocation5 + $0x760] sm:$0xff] }
  0x6b   :  { %550 = vmatprep.subr.mxu0 %v122_v22  ;;  %613 = vmatprep.subr.mxu1 %v168_v33  ;;  %v308_v22 = vld [vmem:[#allocation5 + $0x860] sm:$0xff]  ;;  %v275_v33 = vld [vmem:[#allocation5 + $0x758] sm:$0xff] }
  0x6c   :  { %551 = vmatpush1.msra.mxu0 %v121_v24  ;;  %614 = vmatpush1.msra.mxu1 %v167_v35  ;;  %v298_v24 = vld [vmem:[#allocation5 + $0x810] sm:$0xff]  ;;  %v265_v35 = vld [vmem:[#allocation5 + $0x708] sm:$0xff] }
  0x6d   :  { %552 = vmatprep.subr.mxu0 %v111_v26  ;;  %615 = vmatprep.subr.mxu1 %v157_v37  ;;  %v376_v26 = vld [vmem:[#allocation5 + $0xa80] sm:$0xff] }
  0x6e   :  { %553 = vmatpush1.msra.mxu0 %v110_v28  ;;  %616 = vmatpush1.msra.mxu1 %v156_v39  ;;  %v366_v28 = vld [vmem:[#allocation5 + $0xa30] sm:$0xff]  ;;  %v264_v37 = vld [vmem:[#allocation5 + $0x700] sm:$0xff] }
  0x6f   :  { %554 = vmatprep.subr.mxu0 %v100_v30  ;;  %617 = vmatprep.subr.mxu1 %v146_v41  ;;  %v365_v30 = vld [vmem:[#allocation5 + $0xa28] sm:$0xff]  ;;  %v254_v39 = vld [vmem:[#allocation5 + $0x6b0] sm:$0xff] }
  0x70   :  { %555 = vmatpush1.msra.mxu0 %v99_v32  ;;  %618 = vmatpush1.msra.mxu1 %v145_v43  ;;  %v355_v32 = vld [vmem:[#allocation5 + $0x9d8] sm:$0xff]  ;;  %v253_v41 = vld [vmem:[#allocation5 + $0x6a8] sm:$0xff] }
  0x71   :  { %556 = vmatprep.subr.mxu0 %v89_v34  ;;  %619 = vmatprep.subr.mxu1 %v135_v45  ;;  %v354_v34 = vld [vmem:[#allocation5 + $0x9d0] sm:$0xff]  ;;  %v243_v43 = vld [vmem:[#allocation5 + $0x658] sm:$0xff] }
  0x72   :  { %557 = vmatpush1.msra.mxu0 %v88_v36  ;;  %620 = vmatpush1.msra.mxu1 %v134_v47  ;;  %v344_v36 = vld [vmem:[#allocation5 + $0x980] sm:$0xff]  ;;  %v242_v45 = vld [vmem:[#allocation5 + $0x650] sm:$0xff] }
  0x73   :  { %558 = vmatprep.subr.mxu0 %v78_v38  ;;  %621 = vmatprep.subr.mxu1 %v124_v49  ;;  %v343_v38 = vld [vmem:[#allocation5 + $0x978] sm:$0xff]  ;;  %v232_v47 = vld [vmem:[#allocation5 + $0x600] sm:$0xff] }
  0x74   :  { %559 = vmatpush1.msra.mxu0 %v77_v40  ;;  %622 = vmatpush1.msra.mxu1 %v123_v51  ;;  %v333_v40 = vld [vmem:[#allocation5 + $0x928] sm:$0xff]  ;;  %v231_v49 = vld [vmem:[#allocation5 + $0x5f8] sm:$0xff] }
  0x75   :  { %560 = vmatprep.subr.mxu0 %v67_v42  ;;  %623 = vmatprep.subr.mxu1 %v113_v53  ;;  %v332_v42 = vld [vmem:[#allocation5 + $0x920] sm:$0xff]  ;;  %v221_v51 = vld [vmem:[#allocation5 + $0x5a8] sm:$0xff] }
  0x76   :  { %561 = vmatpush1.msra.mxu0 %v66_v44  ;;  %624 = vmatpush1.msra.mxu1 %v112_v56  ;;  %v322_v44 = vld [vmem:[#allocation5 + $0x8d0] sm:$0xff]  ;;  %v220_v53 = vld [vmem:[#allocation5 + $0x5a0] sm:$0xff] }
  0x77   :  { %562 = vmatprep.subr.mxu0 %v56_v46  ;;  %625 = vmatprep.subr.mxu1 %v102_v58  ;;  %v321_v46 = vld [vmem:[#allocation5 + $0x8c8] sm:$0xff]  ;;  %v214_v56 = vld [vmem:[#allocation5 + $0x570] sm:$0xff] }
  0x78   :  { %563 = vmatpush1.msra.mxu0 %v55_v48  ;;  %626 = vmatpush1.msra.mxu1 %v101_v60  ;;  %v311_v48 = vld [vmem:[#allocation5 + $0x878] sm:$0xff]  ;;  %v289_v58 = vld [vmem:[#allocation5 + $0x7c8] sm:$0xff]  ;;  %v288_v60 = vld [vmem:[#allocation5 + $0x7c0] sm:$0xff] }
  0x79   :  { %564 = vmatprep.subr.mxu0 %v45_v50  ;;  %627 = vmatprep.subr.mxu1 %v91_v62  ;;  %v310_v50 = vld [vmem:[#allocation5 + $0x870] sm:$0xff] }
  0x7a   :  { %565 = vmatpush1.msra.mxu0 %v44_v52  ;;  %628 = vmatpush1.msra.mxu1 %v90_v0  ;;  %v300_v52 = vld [vmem:[#allocation5 + $0x820] sm:$0xff]  ;;  %v278_v62 = vld [vmem:[#allocation5 + $0x770] sm:$0xff]  ;;  %v277_v0 = vld [vmem:[#allocation5 + $0x768] sm:$0xff] }
  0x7b   :  { %566 = vmatprep.subr.mxu0 %v386_v54  ;;  %629 = vmatprep.subr.mxu1 %v80_v2  ;;  %v299_v54 = vld [vmem:[#allocation5 + $0x818] sm:$0xff] }
  0x7c   :  { %567 = vmatpush2.msra.mxu0 %v385_v57  ;;  %630 = vmatpush1.msra.mxu1 %v79_v4  ;;  %v213_v57 = vld [vmem:[#allocation5 + $0x568] sm:$0xff]  ;;  %v267_v2 = vld [vmem:[#allocation5 + $0x718] sm:$0xff]  ;;  %v266_v4 = vld [vmem:[#allocation5 + $0x710] sm:$0xff] }
  0x7d   :  { %568 = vmatprep.subr.mxu0 %v375_v59  ;;  %631 = vmatprep.subr.mxu1 %v69_v6  ;;  %v203_v59 = vld [vmem:[#allocation5 + $0x518] sm:$0xff]  ;;  %v256_v6 = vld [vmem:[#allocation5 + $0x6c0] sm:$0xff] }
  0x7e   :  { %569 = vmatpush2.msra.mxu0 %v374_v61  ;;  %632 = vmatpush1.msra.mxu1 %v68_v8  ;;  %v202_v61 = vld [vmem:[#allocation5 + $0x510] sm:$0xff]  ;;  %v255_v8 = vld [vmem:[#allocation5 + $0x6b8] sm:$0xff] }
  0x7f   :  { %570 = vmatprep.subr.mxu0 %v364_v63  ;;  %633 = vmatprep.subr.mxu1 %v58_v10  ;;  %v192_v63 = vld [vmem:[#allocation5 + $0x4c0] sm:$0xff]  ;;  %v245_v10 = vld [vmem:[#allocation5 + $0x668] sm:$0xff] }
  0x80   :  { %571 = vmatpush2.msra.mxu0 %v363_v1  ;;  %634 = vmatpush1.msra.mxu1 %v57_v12  ;;  %v191_v1 = vld [vmem:[#allocation5 + $0x4b8] sm:$0xff]  ;;  %v244_v12 = vld [vmem:[#allocation5 + $0x660] sm:$0xff] }
  0x81   :  { %572 = vmatprep.subr.mxu0 %v353_v3  ;;  %635 = vmatprep.subr.mxu1 %v47_v14  ;;  %v181_v3 = vld [vmem:[#allocation5 + $0x468] sm:$0xff]  ;;  %v234_v14 = vld [vmem:[#allocation5 + $0x610] sm:$0xff] }
  0x82   :  { %573 = vmatpush2.msra.mxu0 %v352_v5  ;;  %636 = vmatpush1.msra.mxu1 %v46_v17  ;;  %v180_v5 = vld [vmem:[#allocation5 + $0x460] sm:$0xff]  ;;  %v233_v17 = vld [vmem:[#allocation5 + $0x608] sm:$0xff] }
  0x83   :  { %574 = vmatprep.subr.mxu0 %v342_v7  ;;  %637 = vmatprep.subr.mxu1 %v388_v19  ;;  %v170_v7 = vld [vmem:[#allocation5 + $0x410] sm:$0xff]  ;;  %v223_v19 = vld [vmem:[#allocation5 + $0x5b8] sm:$0xff] }
  0x84   :  { %575 = vmatpush2.msra.mxu0 %v341_v9  ;;  %638 = vmatpush2.msra.mxu1 %v387_v21  ;;  %v169_v9 = vld [vmem:[#allocation5 + $0x408] sm:$0xff]  ;;  %v222_v21 = vld [vmem:[#allocation5 + $0x5b0] sm:$0xff] }
  0x85   :  { %576 = vmatprep.subr.mxu0 %v331_v11  ;;  %639 = vmatprep.subr.mxu1 %v377_v23  ;;  %v159_v11 = vld [vmem:[#allocation5 + $0x3b8] sm:$0xff]  ;;  %v126_v23 = vld [vmem:[#allocation5 + $0x2b0] sm:$0xff] }
  0x86   :  { %577 = vmatpush2.msra.mxu0 %v330_v13  ;;  %598 = vmatprep.mubr.f32.mxu0 %v977_v16  ;;  %v158_v13 = vld [vmem:[#allocation5 + $0x3b0] sm:$0xff] }
  0x87   :  { %578 = vmatprep.subr.mxu0 %v320_v15  ;;  %640 = vmatpush2.msra.mxu1 %v376_v26  ;;  %v148_v15 = vld [vmem:[#allocation5 + $0x360] sm:$0xff]  ;;  %v115_v26 = vld [vmem:[#allocation5 + $0x258] sm:$0xff] }
  0x88   :  { %579 = vmatpush2.msra.mxu0 %v319_v18  ;;  %641 = vmatprep.subr.mxu1 %v366_v28  ;;  %v147_v18 = vld [vmem:[#allocation5 + $0x358] sm:$0xff]  ;;  %v114_v28 = vld [vmem:[#allocation5 + $0x250] sm:$0xff] }
  0x89   :  { %580 = vmatprep.subr.mxu0 %v309_v20  ;;  %642 = vmatpush2.msra.mxu1 %v365_v30  ;;  %v137_v20 = vld [vmem:[#allocation5 + $0x308] sm:$0xff]  ;;  %v104_v30 = vld [vmem:[#allocation5 + $0x200] sm:$0xff] }
  0x8a   :  { %581 = vmatpush2.msra.mxu0 %v308_v22  ;;  %643 = vmatprep.subr.mxu1 %v355_v32  ;;  %v136_v22 = vld [vmem:[#allocation5 + $0x300] sm:$0xff]  ;;  %v103_v32 = vld [vmem:[#allocation5 + $0x1f8] sm:$0xff] }
  0x8b   :  { %582 = vmatprep.subr.mxu0 %v298_v24  ;;  %644 = vmatpush2.msra.mxu1 %v354_v34  ;;  %v391_v24 = vld [vmem:[#allocation5 + $0xaf8] sm:$0xff]  ;;  %v93_v34 = vld [vmem:[#allocation5 + $0x1a8] sm:$0xff] }
  0x8c   :  { %583 = vmatpush2.msra.mxu0 %v297_v25  ;;  %645 = vmatprep.subr.mxu1 %v344_v36  ;;  %v125_v25 = vld [vmem:[#allocation5 + $0x2a8] sm:$0xff]  ;;  %v358_v36 = vld [vmem:[#allocation5 + $0x9f0] sm:$0xff] }
  0x8d   :  { %584 = vmatprep.subr.mxu0 %v287_v27  ;;  %646 = vmatpush2.msra.mxu1 %v343_v38  ;;  %v215_v27 = vld [vmem:[#allocation5 + $0x578] sm:$0xff]  ;;  %v182_v38 = vld [vmem:[#allocation5 + $0x470] sm:$0xff] }
  0x8e   :  { %585 = vmatpush2.msra.mxu0 %v286_v29  ;;  %647 = vmatprep.subr.mxu1 %v333_v40  ;;  %v380_v29 = vld [vmem:[#allocation5 + $0xaa0] sm:$0xff]  ;;  %v347_v40 = vld [vmem:[#allocation5 + $0x998] sm:$0xff] }
  0x8f   :  { %586 = vmatprep.subr.mxu0 %v276_v31  ;;  %648 = vmatpush2.msra.mxu1 %v332_v42  ;;  %v204_v31 = vld [vmem:[#allocation5 + $0x520] sm:$0xff]  ;;  %v171_v42 = vld [vmem:[#allocation5 + $0x418] sm:$0xff] }
  0x90   :  { %587 = vmatpush2.msra.mxu0 %v275_v33  ;;  %649 = vmatprep.subr.mxu1 %v322_v44  ;;  %v369_v33 = vld [vmem:[#allocation5 + $0xa48] sm:$0xff]  ;;  %v336_v44 = vld [vmem:[#allocation5 + $0x940] sm:$0xff] }
  0x91   :  { %588 = vmatprep.subr.mxu0 %v265_v35  ;;  %650 = vmatpush2.msra.mxu1 %v321_v46  ;;  %v193_v35 = vld [vmem:[#allocation5 + $0x4c8] sm:$0xff]  ;;  %v160_v46 = vld [vmem:[#allocation5 + $0x3c0] sm:$0xff] }
  0x92   :  { %589 = vmatpush2.msra.mxu0 %v264_v37  ;;  %651 = vmatprep.subr.mxu1 %v311_v48  ;;  %v82_v37 = vld [vmem:[#allocation5 + $0x150] sm:$0xff]  ;;  %v325_v48 = vld [vmem:[#allocation5 + $0x8e8] sm:$0xff] }
  0x93   :  { %590 = vmatprep.subr.mxu0 %v254_v39  ;;  %652 = vmatpush2.msra.mxu1 %v310_v50  ;;  %v81_v39 = vld [vmem:[#allocation5 + $0x148] sm:$0xff] }
  0x94   :  { %591 = vmatpush2.msra.mxu0 %v253_v41  ;;  %653 = vmatprep.subr.mxu1 %v300_v52  ;;  %v71_v41 = vld [vmem:[#allocation5 + $0xf8] sm:$0xff]  ;;  %v149_v50 = vld [vmem:[#allocation5 + $0x368] sm:$0xff]  ;;  %v314_v52 = vld [vmem:[#allocation5 + $0x890] sm:$0xff] }
  0x95   :  { %592 = vmatprep.subr.mxu0 %v243_v43  ;;  %654 = vmatpush2.msra.mxu1 %v299_v54  ;;  %v70_v43 = vld [vmem:[#allocation5 + $0xf0] sm:$0xff] }
  0x96   :  { %593 = vmatpush2.msra.mxu0 %v242_v45  ;;  %655 = vmatprep.subr.mxu1 %v289_v58  ;;  %v60_v45 = vld [vmem:[#allocation5 + $0xa0] sm:$0xff]  ;;  %v138_v54 = vld [vmem:[#allocation5 + $0x310] sm:$0xff]  ;;  %v379_v58 = vld [vmem:[#allocation5 + $0xa98] sm:$0xff] }
  0x97   :  { %594 = vmatprep.subr.mxu0 %v232_v47  ;;  %656 = vmatpush2.msra.mxu1 %v288_v60  ;;  %v59_v47 = vld [vmem:[#allocation5 + $0x98] sm:$0xff]  ;;  %v378_v60 = vld [vmem:[#allocation5 + $0xa90] sm:$0xff] }
  0x98   :  { %595 = vmatpush2.msra.mxu0 %v231_v49  ;;  %657 = vmatprep.subr.mxu1 %v278_v62  ;;  %v49_v49 = vld [vmem:[#allocation5 + $0x48] sm:$0xff]  ;;  %v368_v62 = vld [vmem:[#allocation5 + $0xa40] sm:$0xff] }
  0x99   :  { %596 = vmatprep.subr.mxu0 %v221_v51  ;;  %658 = vmatpush2.msra.mxu1 %v277_v0  ;;  %v48_v51 = vld [vmem:[#allocation5 + $0x40] sm:$0xff]  ;;  %v367_v0 = vld [vmem:[#allocation5 + $0xa38] sm:$0xff] }
  0x9a   :  { %597 = vmatpush2.msra.mxu0 %v220_v53  ;;  %659 = vmatprep.subr.mxu1 %v267_v2  ;;  %v390_v53 = vld [vmem:[#allocation5 + $0xaf0] sm:$0xff]  ;;  %v357_v2 = vld [vmem:[#allocation5 + $0x9e8] sm:$0xff] }
  0x9b   :  { %599 = vmatmul.mubr.f32.vlgmr.msra.gmra.mxu0 %v980_v55  ;;  %676 = vmatprep.subr.mxu0 %v214_v56  ;;  %v389_v56 = vld [vmem:[#allocation5 + $0xae8] sm:$0xff] }
  0x9c   :  { %677 = vmatpush1.msra.mxu0 %v213_v57  ;;  %660 = vmatpush2.msra.mxu1 %v266_v4  ;;  %v303_v57 = vld [vmem:[#allocation5 + $0x838] sm:$0xff]  ;;  %v356_v4 = vld [vmem:[#allocation5 + $0x9e0] sm:$0xff] }
  0x9d   :  { %678 = vmatprep.subr.mxu0 %v203_v59  ;;  %661 = vmatprep.subr.mxu1 %v256_v6  ;;  %v127_v59 = vld [vmem:[#allocation5 + $0x2b8] sm:$0xff]  ;;  %v346_v6 = vld [vmem:[#allocation5 + $0x990] sm:$0xff] }
  0x9e   :  { %679 = vmatpush1.msra.mxu0 %v202_v61  ;;  %662 = vmatpush2.msra.mxu1 %v255_v8  ;;  %v292_v61 = vld [vmem:[#allocation5 + $0x7e0] sm:$0xff]  ;;  %v345_v8 = vld [vmem:[#allocation5 + $0x988] sm:$0xff] }
  0x9f   :  { %680 = vmatprep.subr.mxu0 %v192_v63  ;;  %663 = vmatprep.subr.mxu1 %v245_v10  ;;  %v116_v63 = vld [vmem:[#allocation5 + $0x260] sm:$0xff]  ;;  %v335_v10 = vld [vmem:[#allocation5 + $0x938] sm:$0xff] }
  0xa0   :  { %681 = vmatpush1.msra.mxu0 %v191_v1  ;;  %664 = vmatpush2.msra.mxu1 %v244_v12  ;;  %v281_v1 = vld [vmem:[#allocation5 + $0x788] sm:$0xff]  ;;  %v334_v12 = vld [vmem:[#allocation5 + $0x930] sm:$0xff] }
  0xa1   :  { %682 = vmatprep.subr.mxu0 %v181_v3  ;;  %665 = vmatprep.subr.mxu1 %v234_v14  ;;  %v105_v3 = vld [vmem:[#allocation5 + $0x208] sm:$0xff]  ;;  %v324_v14 = vld [vmem:[#allocation5 + $0x8e0] sm:$0xff] }
  0xa2   :  { %683 = vmatpush1.msra.mxu0 %v180_v5  ;;  %666 = vmatpush2.msra.mxu1 %v233_v17  ;;  %v270_v5 = vld [vmem:[#allocation5 + $0x730] sm:$0xff]  ;;  %v323_v17 = vld [vmem:[#allocation5 + $0x8d8] sm:$0xff] }
  0xa3   :  { %684 = vmatprep.subr.mxu0 %v170_v7  ;;  %667 = vmatprep.subr.mxu1 %v223_v19  ;;  %v94_v7 = vld [vmem:[#allocation5 + $0x1b0] sm:$0xff]  ;;  %v313_v19 = vld [vmem:[#allocation5 + $0x888] sm:$0xff] }
  0xa4   :  { %685 = vmatpush1.msra.mxu0 %v169_v9  ;;  %668 = vmatpush2.msra.mxu1 %v222_v21  ;;  %v259_v9 = vld [vmem:[#allocation5 + $0x6d8] sm:$0xff]  ;;  %v312_v21 = vld [vmem:[#allocation5 + $0x880] sm:$0xff] }
  0xa5   :  { %686 = vmatprep.subr.mxu0 %v159_v11  ;;  %669 = vmatprep.mubr.f32.mxu1 %v977_v16  ;;  %v92_v16 = vld [vmem:[#allocation5 + $0x1a0] sm:$0xff]  ;;  %v83_v11 = vld [vmem:[#allocation5 + $0x158] sm:$0xff] }
  0xa6   :  { %687 = vmatpush1.msra.mxu0 %v158_v13  ;;  %844 = vmatprep.subr.mxu1 %v391_v24  ;;  %v248_v13 = vld [vmem:[#allocation5 + $0x680] sm:$0xff]  ;;  %v50_v24 = vld [vmem:[#allocation5 + $0x50] sm:$0xff] }
  0xa7   :  { %688 = vmatprep.subr.mxu0 %v148_v15  ;;  %670 = vmatmul.mubr.f32.vlgmr.msra.gmra.mxu1 %v980_v55  ;;  %v72_v15 = vld [vmem:[#allocation5 + $0x100] sm:$0xff] }
  0xa8   :  { %689 = vmatpush1.msra.mxu0 %v147_v18  ;;  %845 = vmatpush3.msra.mxu1 %v215_v27  ;;  %v237_v18 = vld [vmem:[#allocation5 + $0x628] sm:$0xff]  ;;  %v290_v27 = vld [vmem:[#allocation5 + $0x7d0] sm:$0xff] }
  0xa9   :  { %690 = vmatprep.subr.mxu0 %v137_v20  ;;  %846 = vmatprep.subr.mxu1 %v380_v29  ;;  %v61_v20 = vld [vmem:[#allocation5 + $0xa8] sm:$0xff]  ;;  %v884_v29 = vld [vmem:[#allocation2 + $0x8] sm:$0xff] }
  0xaa   :  { %691 = vmatpush1.msra.mxu0 %v136_v22  ;;  %847 = vmatpush3.msra.mxu1 %v204_v31  ;;  %v226_v22 = vld [vmem:[#allocation5 + $0x5d0] sm:$0xff]  ;;  %v269_v31 = vld [vmem:[#allocation5 + $0x728] sm:$0xff] }
  0xab   :  { %692 = vmatprep.subr.mxu0 %v126_v23  ;;  %848 = vmatprep.subr.mxu1 %v369_v33  ;;  %v302_v23 = vld [vmem:[#allocation5 + $0x830] sm:$0xff] }
  0xac   :  { %693 = vmatpush1.msra.mxu0 %v125_v25  ;;  %849 = vmatpush3.msra.mxu1 %v193_v35  ;;  %v301_v25 = vld [vmem:[#allocation5 + $0x828] sm:$0xff]  ;;  %v258_v33 = vld [vmem:[#allocation5 + $0x6d0] sm:$0xff]  ;;  %v247_v35 = vld [vmem:[#allocation5 + $0x678] sm:$0xff] }
  0xad   :  { %694 = vmatprep.subr.mxu0 %v115_v26  ;;  %850 = vmatprep.subr.mxu1 %v358_v36  ;;  %v291_v26 = vld [vmem:[#allocation5 + $0x7d8] sm:$0xff]  ;;  %v236_v36 = vld [vmem:[#allocation5 + $0x620] sm:$0xff] }
  0xae   :  { %695 = vmatpush1.msra.mxu0 %v114_v28  ;;  %851 = vmatpush3.msra.mxu1 %v182_v38  ;;  %v280_v28 = vld [vmem:[#allocation5 + $0x780] sm:$0xff]  ;;  %v225_v38 = vld [vmem:[#allocation5 + $0x5c8] sm:$0xff] }
  0xaf   :  { %696 = vmatprep.subr.mxu0 %v104_v30  ;;  %852 = vmatprep.subr.mxu1 %v347_v40  ;;  %v279_v30 = vld [vmem:[#allocation5 + $0x778] sm:$0xff] }
  0xb0   :  { %697 = vmatpush1.msra.mxu0 %v103_v32  ;;  %853 = vmatpush3.msra.mxu1 %v171_v42  ;;  %v268_v32 = vld [vmem:[#allocation5 + $0x720] sm:$0xff] }
  0xb1   :  { %698 = vmatprep.subr.mxu0 %v93_v34  ;;  %854 = vmatprep.subr.mxu1 %v336_v44  ;;  %v257_v34 = vld [vmem:[#allocation5 + $0x6c8] sm:$0xff] }
  0xb2   :  { %699 = vmatpush1.msra.mxu0 %v92_v16  ;;  %855 = vmatpush3.msra.mxu1 %v160_v46  ;;  %v246_v16 = vld [vmem:[#allocation5 + $0x670] sm:$0xff] }
  0xb3   :  { %700 = vmatprep.subr.mxu0 %v82_v37  ;;  %856 = vmatprep.subr.mxu1 %v325_v48  ;;  %v235_v37 = vld [vmem:[#allocation5 + $0x618] sm:$0xff] }
  0xb4   :  { %701 = vmatpush1.msra.mxu0 %v81_v39  ;;  %857 = vmatpush3.msra.mxu1 %v149_v50  ;;  %v224_v39 = vld [vmem:[#allocation5 + $0x5c0] sm:$0xff] }
  0xb5   :  { %702 = vmatprep.subr.mxu0 %v71_v41  ;;  %858 = vmatprep.subr.mxu1 %v314_v52 }
  0xb6   :  { %703 = vmatpush1.msra.mxu0 %v70_v43  ;;  %859 = vmatpush3.msra.mxu1 %v138_v54 }
  0xb7   :  { %704 = vmatprep.subr.mxu0 %v60_v45  ;;  %860 = vmatprep.subr.mxu1 %v303_v57 }
  0xb8   :  { %705 = vmatpush1.msra.mxu0 %v59_v47  ;;  %861 = vmatpush3.msra.mxu1 %v127_v59 }
  0xb9   :  { %706 = vmatprep.subr.mxu0 %v49_v49  ;;  %862 = vmatprep.subr.mxu1 %v292_v61 }
  0xba   :  { %707 = vmatpush1.msra.mxu0 %v48_v51  ;;  %863 = vmatpush3.msra.mxu1 %v116_v63 }
  0xbb   :  { %708 = vmatprep.subr.mxu0 %v390_v53  ;;  %864 = vmatprep.subr.mxu1 %v281_v1 }
  0xbc   :  { %709 = vmatpush2.msra.mxu0 %v389_v56  ;;  %865 = vmatpush3.msra.mxu1 %v105_v3 }
  0xbd   :  { %710 = vmatprep.subr.mxu0 %v379_v58  ;;  %866 = vmatprep.subr.mxu1 %v270_v5 }
  0xbe   :  { %711 = vmatpush2.msra.mxu0 %v378_v60  ;;  %867 = vmatpush3.msra.mxu1 %v94_v7 }
  0xbf   :  { %712 = vmatprep.subr.mxu0 %v368_v62  ;;  %868 = vmatprep.subr.mxu1 %v259_v9 }
  0xc0   :  { %713 = vmatpush2.msra.mxu0 %v367_v0  ;;  %869 = vmatpush3.msra.mxu1 %v83_v11 }
  0xc1   :  { %714 = vmatprep.subr.mxu0 %v357_v2  ;;  %870 = vmatprep.subr.mxu1 %v248_v13 }
  0xc2   :  { %715 = vmatpush2.msra.mxu0 %v356_v4  ;;  %871 = vmatpush3.msra.mxu1 %v72_v15 }
  0xc3   :  { %716 = vmatprep.subr.mxu0 %v346_v6  ;;  %872 = vmatprep.subr.mxu1 %v237_v18 }
  0xc4   :  { %717 = vmatpush2.msra.mxu0 %v345_v8  ;;  %873 = vmatpush3.msra.mxu1 %v61_v20 }
  0xc5   :  { %718 = vmatprep.subr.mxu0 %v335_v10  ;;  %874 = vmatprep.subr.mxu1 %v226_v22 }
  0xc6   :  { %719 = vmatpush2.msra.mxu0 %v334_v12  ;;  %875 = vmatpush3.msra.mxu1 %v50_v24 }
  0xc7   :  { %720 = vmatprep.subr.mxu0 %v324_v14  ;;  %811 = vmatprep.mubr.f32.mxu1 %v884_v29 }
  0xc8   :  { %721 = vmatpush2.msra.mxu0 %v323_v17  ;;  %812 = vmatmul.mubr.f32.vlgmr.msra.gmra.mxu1 %v980_v55 }
  0xc9   :  { %722 = vmatprep.subr.mxu0 %v313_v19  ;;  %740 = vmatprep.mubr.f32.mxu0 %v884_v29 }
  0xca   :  { %723 = vmatpush2.msra.mxu0 %v312_v21 }
  0xcb   :  { %724 = vmatprep.subr.mxu0 %v302_v23 }
  0xcc   :  { %725 = vmatpush2.msra.mxu0 %v301_v25 }
  0xcd   :  { %726 = vmatprep.subr.mxu0 %v291_v26 }
  0xce   :  { %727 = vmatpush2.msra.mxu0 %v290_v27 }
  0xcf   :  { %728 = vmatprep.subr.mxu0 %v280_v28 }
  0xd0   :  { %729 = vmatpush2.msra.mxu0 %v279_v30 }
  0xd1   :  { %730 = vmatprep.subr.mxu0 %v269_v31 }
  0xd2   :  { %731 = vmatpush2.msra.mxu0 %v268_v32 }
  0xd3   :  { %732 = vmatprep.subr.mxu0 %v258_v33 }
  0xd4   :  { %733 = vmatpush2.msra.mxu0 %v257_v34 }
  0xd5   :  { %734 = vmatprep.subr.mxu0 %v247_v35 }
  0xd6   :  { %735 = vmatpush2.msra.mxu0 %v246_v16 }
  0xd7   :  { %736 = vmatprep.subr.mxu0 %v236_v36 }
  0xd8   :  { %737 = vmatpush2.msra.mxu0 %v235_v37 }
  0xd9   :  { %738 = vmatprep.subr.mxu0 %v225_v38 }
  0xda   :  { %739 = vmatpush2.msra.mxu0 %v224_v39 }
  0xdb   :  { %741 = vmatmul.mubr.f32.vlgmr.msra.gmra.mxu0 %v980_v55 }
 0x11b   :  { %v458_v40 = vpop.f32.mrf.mxu0 }
 0x11c   :  { %817 = vst [vmem:[#allocation7] sm:$0xff] %v458_v40 }
 0x11d   :  { %v460_v41 = vpop.f32.mrf.mxu0 }
 0x11e   :  { %818 = vst [vmem:[#allocation7 + $0x8] sm:$0xff] %v460_v41 }
 0x123   :  { %v529_v42 = vpop.f32.mrf.mxu1 }
 0x124   :  { %819 = vst [vmem:[#allocation7 + $0x10] sm:$0xff] %v529_v42 }
 0x125   :  { %v531_v43 = vpop.f32.mrf.mxu1 }
 0x126   :  { %820 = vst [vmem:[#allocation7 + $0x18] sm:$0xff] %v531_v43 }
 0x15b   :  { %v600_v44 = vpop.f32.mrf.mxu0 }
 0x15c   :  { %821 = vst [vmem:[#allocation7 + $0x20] sm:$0xff] %v600_v44 }
 0x15d   :  { %v602_v45 = vpop.f32.mrf.mxu0 }
 0x15e   :  { %822 = vst [vmem:[#allocation7 + $0x28] sm:$0xff] %v602_v45 }
 0x167   :  { %v671_v46 = vpop.f32.mrf.mxu1 }
 0x168   :  { %823 = vst [vmem:[#allocation7 + $0x30] sm:$0xff] %v671_v46 }
 0x169   :  { %v673_v47 = vpop.f32.mrf.mxu1 }
 0x16a   :  { %824 = vst [vmem:[#allocation7 + $0x38] sm:$0xff] %v673_v47 }
 0x188   :  { %v876_v48 = vpop.f32.mrf.mxu1 }
 0x18a   :  { %v877_v49 = vpop.f32.mrf.mxu1 }
 0x18b   :  { %v878_v50 = vadd.f32 %v877_v49, %v876_v48 }
 0x18d   :  { %827 = vst [vmem:[#allocation7 + $0x50] sm:$0xff] %v878_v50 }
 0x19b   :  { %v742_v55 = vpop.f32.mrf.mxu0 }
 0x19c   :  { %825 = vst [vmem:[#allocation7 + $0x40] sm:$0xff] %v742_v55 }
 0x19d   :  { %v744_v51 = vpop.f32.mrf.mxu0 }
 0x19e   :  { %826 = vst [vmem:[#allocation7 + $0x48] sm:$0xff] %v744_v51 }
 0x19f   :  { %936 = shalt.err (!%p933_p0)
}
 0x1a0   :  { %837 = dma.vmem_to_hbm [thread:$0]  %s835_s1, 1408, %s996_s2, [#allocation4]  }
 0x1a1   :  { %949 = dma.done.wait [#allocation4], 1408  }
 0x1a2   :  { %950 = vsyncadd [#allocation4], 4294965888 }
 0x1a3   :  { %841 = vsyncpa [#allocation3], 1 }
 0x1a4   :  { %842 = vsyncpa [#allocation6], 1 }
 0x1a5   :  { %843 = vsyncpa [#allocation4], 1 }

</bundles_post_ra>
